<compile_context>
chip_gen: v5e
topology: v5e:2x2
jax: 0.10.0
libtpu: 0.0.40
codegen_flags: <defaults>
</compile_context>

<pallas_src>
import math

import jax
import jax.numpy as jnp
from jax.experimental import pallas as pl
from jax.experimental.pallas import tpu as pltpu


def _attention_lstm_kernel(x2d_ref, a_ph_ref, a_hp_ref, wx_ref, wh_ref,
                           wattn_ref, b_ref, h_out_ref, xwx_ref, w1_ref):
    """Whole attention-LSTM recurrence in a single kernel invocation.

    x2d_ref:   (T*N, D)     time-major inputs, flattened      (VMEM, resident)
    a_ph_ref:  (N, P, H)    CNN features, H on lanes
    a_hp_ref:  (N, H, P)    CNN features, P on lanes (A_flat reference layout)
    wx_ref:    (D, 4H)   wh_ref: (H, 4H)   wattn_ref: (H, 4H)   b_ref: (1, 4H)
    h_out_ref: (T, N, H)    hidden states (output)
    xwx_ref:   (T*N, 4H)    scratch: hoisted x@Wx + b
    w1_ref:    (N, H, 4H+P) scratch: fused per-batch RHS [Wh | A_flat/sqrt(H)]
    """
    TN, _ = x2d_ref.shape
    N, P, H = a_ph_ref.shape
    T = TN // N
    G = 4 * H

    # ---------------- hoisted (loop-invariant) block ----------------
    a_ph = a_ph_ref[...]                                    # (N, P, H)
    inv_sqrt_h = 1.0 / math.sqrt(H)

    # (a) Input projection + bias: no dependence on the recurrence, one MXU op.
    xwx_ref[...] = (
        jnp.dot(x2d_ref[...], wx_ref[...], preferred_element_type=jnp.float32)
        + jnp.broadcast_to(b_ref[...], (TN, G)))

    # (b) AW = A_flat^T @ Wattn -> (N, P, 4H): per-step attention output then
    #     needs only a single K=P matmul.
    aw = jnp.einsum('nph,nhg->npg', a_ph,
                    jnp.broadcast_to(wattn_ref[...][None], (N, H, G)),
                    preferred_element_type=jnp.float32)     # (N, P, 4H)

    # (c) Fused per-batch RHS: lanes [0, 4H) give prev_h @ Wh, lanes [4H, 4H+P)
    #     give the attention scores with 1/sqrt(H) folded in.  Both segments
    #     start on a 128-lane boundary (4H = 128), so per-step output slices
    #     are plain lane-group selects (no lane shifts).
    w1_ref[:, :, 0:G] = jnp.broadcast_to(wh_ref[...][None], (N, H, G))
    w1_ref[:, :, G:] = a_hp_ref[...] * inv_sqrt_h
    w1 = w1_ref[...]                                        # (N, H, 4H+P)

    # (d) h0 = c0 = mean of A over the spatial positions.
    h0 = jnp.mean(a_ph, axis=1)                             # (N, H)

    # ---------------- T-step recurrence (unrolled) ----------------
    def step(t, carry):
        prev_h, prev_c = carry                              # (N, H) f32 each

        # One MXU push: prev_h@Wh gate contribution AND attention scores.
        y = jnp.einsum('nqh,nhk->nqk', prev_h[:, None, :], w1,
                       preferred_element_type=jnp.float32)  # (N, 1, 4H+P)

        # Softmax without max-shift (scores are O(1) here); normalization is
        # applied AFTER the attention matmul so the lane-sum + reciprocal
        # overlap with the MXU op instead of serializing in front of it.
        exps = jnp.exp(y[:, :, G:])                         # (N, 1, P)
        attn_g = jnp.einsum('nqp,npg->nqg', exps, aw,
                            preferred_element_type=jnp.float32)   # (N, 1, 4H)
        # Exact reciprocal: one (N,1,1) value per step, approx buys nothing.
        inv_den = pl.reciprocal(jnp.sum(exps, axis=-1, keepdims=True))

        # Hoisted x@Wx + b for this step.
        xg = xwx_ref[pl.ds(pl.multiple_of(t * N, N), N), :]  # (N, 4H)

        gates = xg + y[:, 0, 0:G] + attn_g[:, 0, :] * inv_den[:, 0, :]

        # One EUP pass over the contiguous i|f|o block, one for g.
        sig = jax.nn.sigmoid(gates[:, 0:3 * H])
        i_g = sig[:, 0:H]
        f_g = sig[:, H:2 * H]
        o_g = sig[:, 2 * H:3 * H]
        g_g = jnp.tanh(gates[:, 3 * H:])

        next_c = f_g * prev_c + i_g * g_g
        next_h = o_g * jnp.tanh(next_c)

        h_out_ref[t] = next_h.astype(h_out_ref.dtype)
        return next_h, next_c

    # Short fixed trip count: unroll so the LLO scheduler sees the whole body.
    jax.lax.fori_loop(0, T, step, (h0, h0), unroll=True)


@jax.jit
def attention_lstm_forward(x, A, Wx, Wh, Wattn, b):
    """x: (N, T, D), A: (N, H, Da, Da) -> h: (N, T, H)."""
    N, T, D = x.shape
    H = A.shape[1]
    P = A.shape[2] * A.shape[3]
    f32 = jnp.float32

    # Wrapper-side layout plumbing only (no hoisted compute): time-major
    # flatten of x and the two A_flat layouts the kernel needs.
    x2d = jnp.transpose(x, (1, 0, 2)).reshape(T * N, D).astype(f32)
    a_hp = A.reshape(N, H, P).astype(f32)                   # (N, H, P) == A_flat
    a_ph = jnp.transpose(a_hp, (0, 2, 1))                   # (N, P, H): H on lanes
    b2 = b.reshape(1, 4 * H).astype(f32)

    vmem = pltpu.MemorySpace.VMEM
    h_tm = pl.pallas_call(
        _attention_lstm_kernel,
        out_shape=jax.ShapeDtypeStruct((T, N, H), x.dtype),
        in_specs=[pl.BlockSpec(memory_space=vmem)] * 7,      # fully VMEM-resident
        out_specs=pl.BlockSpec(memory_space=vmem),
        scratch_shapes=[
            pltpu.VMEM((T * N, 4 * H), jnp.float32),         # hoisted x@Wx + b
            pltpu.VMEM((N, H, 4 * H + P), jnp.float32),      # fused [Wh | A^T/sqrt(H)]
        ],
    )(x2d, a_ph, a_hp, Wx.astype(f32), Wh.astype(f32), Wattn.astype(f32), b2)

    return jnp.transpose(h_tm, (1, 0, 2))                    # (N, T, H)


# ----------------------- pure-JAX reference -----------------------
def _reference_forward(x, A, Wx, Wh, Wattn, b):
    N, T, D = x.shape
    H = A.shape[1]
    A_flat = A.reshape(N, H, -1)
    h0 = jnp.mean(A_flat, axis=2)
    prev_h, prev_c = h0, h0
    hs = []
    for t in range(T):
        scores = jnp.einsum('nh,nhp->np', prev_h, A_flat) / math.sqrt(H)
        w = jax.nn.softmax(scores, axis=1)
        attn = jnp.einsum('nhp,np->nh', A_flat, w)
        a = x[:, t, :] @ Wx + prev_h @ Wh + attn @ Wattn + b
        i = jax.nn.sigmoid(a[:, :H])
        f = jax.nn.sigmoid(a[:, H:2 * H])
        o = jax.nn.sigmoid(a[:, 2 * H:3 * H])
        g = jnp.tanh(a[:, 3 * H:])
        prev_c = f * prev_c + i * g
        prev_h = o * jnp.tanh(prev_c)
        hs.append(prev_h)
    return jnp.stack(hs, axis=1)


if __name__ == "__main__":
    N, T, D, H, Da = 2, 8, 16, 32, 4

    key = jax.random.PRNGKey(0)
    kx, kA, kWx, kWh, kWa = jax.random.split(key, 5)

    x = jax.random.normal(kx, (N, T, D), dtype=jnp.float32)
    A = jax.random.normal(kA, (N, H, Da, Da), dtype=jnp.float32)

    # Deterministic parameter init mirroring AttentionLSTM.__init__
    Wx = jax.random.normal(kWx, (D, 4 * H), dtype=jnp.float32) / math.sqrt(D)
    Wh = jax.random.normal(kWh, (H, 4 * H), dtype=jnp.float32) / math.sqrt(H)
    Wattn = jax.random.normal(kWa, (H, 4 * H), dtype=jnp.float32) / math.sqrt(H)
    b = jnp.zeros((4 * H,), dtype=jnp.float32)

    h = attention_lstm_forward(x, A, Wx, Wh, Wattn, b)
    h = jax.block_until_ready(h)

    h_ref = _reference_forward(x, A, Wx, Wh, Wattn, b)
    assert h.shape == (N, T, H)
    # 1e-4: the kernel computes softmax without max-shift, normalizes after the
    # Wattn matmul and fuses/re-associates the gate matmuls -- mathematically
    # identical but not bit-identical to the pure-f32 reference; still a tight
    # check for an 8-step recurrence with O(1) values.
    assert jnp.allclose(h, h_ref, atol=1e-4, rtol=1e-4), "mismatch vs reference"

    print("KERNEL_OK")
</pallas_src>

<mosaic_0001>
module attributes {stable_mosaic.version = 11 : i64} {
  func.func @_attention_lstm_kernel(%arg0: memref<16x16xf32, #tpu.memory_space<vmem>>, %arg1: memref<2x16x32xf32, #tpu.memory_space<vmem>>, %arg2: memref<2x32x16xf32, #tpu.memory_space<vmem>>, %arg3: memref<16x128xf32, #tpu.memory_space<vmem>>, %arg4: memref<32x128xf32, #tpu.memory_space<vmem>>, %arg5: memref<32x128xf32, #tpu.memory_space<vmem>>, %arg6: memref<1x128xf32, #tpu.memory_space<vmem>>, %arg7: memref<8x2x32xf32, #tpu.memory_space<vmem>>, %arg8: memref<16x128xf32, #tpu.memory_space<vmem>>, %arg9: memref<2x32x144xf32, #tpu.memory_space<vmem>>) attributes {dimension_semantics = [], scalar_prefetch = 0 : i64, scratch_operands = 2 : i64, tpu.core_type = #tpu.core_type<tc>} {
    %c0 = arith.constant 0 : index
    %c0_0 = arith.constant 0 : index
    %c0_1 = arith.constant 0 : index
    %0 = vector.load %arg1[%c0, %c0_0, %c0_1] : memref<2x16x32xf32, #tpu.memory_space<vmem>>, vector<2x16x32xf32>
    %c0_2 = arith.constant 0 : index
    %c0_3 = arith.constant 0 : index
    %1 = vector.load %arg0[%c0_2, %c0_3] : memref<16x16xf32, #tpu.memory_space<vmem>>, vector<16x16xf32>
    %c0_4 = arith.constant 0 : index
    %c0_5 = arith.constant 0 : index
    %2 = vector.load %arg3[%c0_4, %c0_5] : memref<16x128xf32, #tpu.memory_space<vmem>>, vector<16x128xf32>
    %cst = arith.constant dense<0.000000e+00> : vector<16x128xf32>
    %3 = tpu.matmul %1, %2, %cst {dimension_numbers = #tpu.dot_dimension_numbers<[1], [0], [0], [1], [0, 0, 1, 1], [], []>} : vector<16x16xf32>, vector<16x128xf32>, vector<16x128xf32> -> vector<16x128xf32>
    %c0_6 = arith.constant 0 : index
    %c0_7 = arith.constant 0 : index
    %4 = vector.load %arg6[%c0_6, %c0_7] : memref<1x128xf32, #tpu.memory_space<vmem>>, vector<1x128xf32>
    %5 = vector.shape_cast %4 : vector<1x128xf32> to vector<1x128xf32>
    %6 = vector.broadcast %5 : vector<1x128xf32> to vector<16x128xf32>
    %7 = arith.addf %3, %6 : vector<16x128xf32>
    %c0_8 = arith.constant 0 : index
    %c0_9 = arith.constant 0 : index
    %8 = vector.load %arg8[%c0_8, %c0_9] : memref<16x128xf32, #tpu.memory_space<vmem>>, vector<16x128xf32>
    tpu.vector_store %arg8[%c0_8, %c0_9], %7 {strides = array<i32>} : memref<16x128xf32, #tpu.memory_space<vmem>>, vector<16x128xf32>,
    %c0_10 = arith.constant 0 : index
    %c0_11 = arith.constant 0 : index
    %9 = vector.load %arg5[%c0_10, %c0_11] : memref<32x128xf32, #tpu.memory_space<vmem>>, vector<32x128xf32>
    %10 = vector.shape_cast %9 : vector<32x128xf32> to vector<1x32x128xf32>
    %11 = vector.shape_cast %10 : vector<1x32x128xf32> to vector<1x32x128xf32>
    %12 = vector.broadcast %11 : vector<1x32x128xf32> to vector<2x32x128xf32>
    "tpu.trace_start"() <{level = 10 : i32, message = "nph,nhg->npg"}> : () -> ()
    %cst_12 = arith.constant dense<0.000000e+00> : vector<2x16x128xf32>
    %13 = tpu.matmul %0, %12, %cst_12 {dimension_numbers = #tpu.dot_dimension_numbers<[2], [1], [1], [2], [0, 0, 0, 1, 1, 2], [0], [0]>} : vector<2x16x32xf32>, vector<2x32x128xf32>, vector<2x16x128xf32> -> vector<2x16x128xf32>
    "tpu.trace_stop"() : () -> ()
    %c0_13 = arith.constant 0 : index
    %c0_14 = arith.constant 0 : index
    %14 = vector.load %arg4[%c0_13, %c0_14] : memref<32x128xf32, #tpu.memory_space<vmem>>, vector<32x128xf32>
    %15 = vector.shape_cast %14 : vector<32x128xf32> to vector<1x32x128xf32>
    %16 = vector.shape_cast %15 : vector<1x32x128xf32> to vector<1x32x128xf32>
    %17 = vector.broadcast %16 : vector<1x32x128xf32> to vector<2x32x128xf32>
    %c0_15 = arith.constant 0 : index
    %c0_16 = arith.constant 0 : index
    %c0_17 = arith.constant 0 : index
    %18 = vector.load %arg9[%c0_15, %c0_16, %c0_17] : memref<2x32x144xf32, #tpu.memory_space<vmem>>, vector<2x32x128xf32>
    tpu.vector_store %arg9[%c0_15, %c0_16, %c0_17], %17 {strides = array<i32>} : memref<2x32x144xf32, #tpu.memory_space<vmem>>, vector<2x32x128xf32>,
    %c0_18 = arith.constant 0 : index
    %c0_19 = arith.constant 0 : index
    %c0_20 = arith.constant 0 : index
    %19 = vector.load %arg2[%c0_18, %c0_19, %c0_20] : memref<2x32x16xf32, #tpu.memory_space<vmem>>, vector<2x32x16xf32>
    %cst_21 = arith.constant 0.176776692 : f32
    %20 = vector.broadcast %cst_21 : f32 to vector<2x32x16xf32>
    %21 = arith.mulf %19, %20 : vector<2x32x16xf32>
    %c0_22 = arith.constant 0 : index
    %c0_23 = arith.constant 0 : index
    %c128 = arith.constant 128 : index
    %22 = vector.load %arg9[%c0_22, %c0_23, %c128] : memref<2x32x144xf32, #tpu.memory_space<vmem>>, vector<2x32x16xf32>
    tpu.vector_store %arg9[%c0_22, %c0_23, %c128], %21 {strides = array<i32>} : memref<2x32x144xf32, #tpu.memory_space<vmem>>, vector<2x32x16xf32>,
    %c0_24 = arith.constant 0 : index
    %c0_25 = arith.constant 0 : index
    %c0_26 = arith.constant 0 : index
    %23 = vector.load %arg9[%c0_24, %c0_25, %c0_26] : memref<2x32x144xf32, #tpu.memory_space<vmem>>, vector<2x32x144xf32>
    %cst_27 = arith.constant dense<0.000000e+00> : vector<2x32xf32>
    %24 = vector.multi_reduction <add>, %0, %cst_27 [1] : vector<2x16x32xf32> to vector<2x32xf32>
    %cst_28 = arith.constant 1.600000e+01 : f32
    %25 = vector.broadcast %cst_28 : f32 to vector<2x32xf32>
    %26 = arith.divf %24, %25 : vector<2x32xf32>
    %c0_i32 = arith.constant 0 : i32
    %27 = vector.shape_cast %26 : vector<2x32xf32> to vector<2x1x32xf32>
    "tpu.trace_start"() <{level = 10 : i32, message = "nqh,nhk->nqk"}> : () -> ()
    %cst_29 = arith.constant dense<0.000000e+00> : vector<2x1x144xf32>
    %28 = tpu.matmul %27, %23, %cst_29 {dimension_numbers = #tpu.dot_dimension_numbers<[2], [1], [1], [2], [0, 0, 0, 1, 1, 2], [0], [0]>} : vector<2x1x32xf32>, vector<2x32x144xf32>, vector<2x1x144xf32> -> vector<2x1x144xf32>
    "tpu.trace_stop"() : () -> ()
    %29 = vector.extract_strided_slice %28 {offsets = [0, 0, 128], sizes = [2, 1, 16], strides = [1, 1, 1]} : vector<2x1x144xf32> to vector<2x1x16xf32>
    %30 = math.exp %29 : vector<2x1x16xf32>
    "tpu.trace_start"() <{level = 10 : i32, message = "nqp,npg->nqg"}> : () -> ()
    %cst_30 = arith.constant dense<0.000000e+00> : vector<2x1x128xf32>
    %31 = tpu.matmul %30, %13, %cst_30 {dimension_numbers = #tpu.dot_dimension_numbers<[2], [1], [1], [2], [0, 0, 0, 1, 1, 2], [0], [0]>} : vector<2x1x16xf32>, vector<2x16x128xf32>, vector<2x1x128xf32> -> vector<2x1x128xf32>
    "tpu.trace_stop"() : () -> ()
    %cst_31 = arith.constant dense<0.000000e+00> : vector<2x1xf32>
    %32 = vector.multi_reduction <add>, %30, %cst_31 [2] : vector<2x1x16xf32> to vector<2x1xf32>
    %33 = vector.shape_cast %32 : vector<2x1xf32> to vector<2x1x1xf32>
    %34 = tpu.reciprocal %33 : vector<2x1x1xf32> -> vector<2x1x1xf32>
    %c2_i32 = arith.constant 2 : i32
    %35 = arith.muli %c0_i32, %c2_i32 : i32
    %36 = tpu.assume_multiple %35, 2 : i32
    %37 = arith.index_cast %36 : i32 to index
    %c0_32 = arith.constant 0 : index
    %38 = vector.load %arg8[%37, %c0_32] : memref<16x128xf32, #tpu.memory_space<vmem>>, vector<2x128xf32>
    %39 = vector.extract_strided_slice %28 {offsets = [0, 0, 0], sizes = [2, 1, 128], strides = [1, 1, 1]} : vector<2x1x144xf32> to vector<2x1x128xf32>
    %40 = vector.shape_cast %39 : vector<2x1x128xf32> to vector<2x128xf32>
    %41 = arith.addf %38, %40 : vector<2x128xf32>
    %42 = vector.shape_cast %31 : vector<2x1x128xf32> to vector<2x128xf32>
    %43 = vector.shape_cast %34 : vector<2x1x1xf32> to vector<2x1xf32>
    %44 = vector.broadcast %43 : vector<2x1xf32> to vector<2x128xf32>
    %45 = arith.mulf %42, %44 : vector<2x128xf32>
    %46 = arith.addf %41, %45 : vector<2x128xf32>
    %47 = vector.extract_strided_slice %46 {offsets = [0, 0], sizes = [2, 96], strides = [1, 1]} : vector<2x128xf32> to vector<2x96xf32>
    %48 = arith.negf %47 : vector<2x96xf32>
    %49 = math.exp %48 : vector<2x96xf32>
    %cst_33 = arith.constant 1.000000e+00 : f32
    %50 = vector.broadcast %cst_33 : f32 to vector<2x96xf32>
    %51 = arith.addf %50, %49 : vector<2x96xf32>
    %52 = arith.divf %50, %51 : vector<2x96xf32>
    %53 = vector.extract_strided_slice %52 {offsets = [0, 0], sizes = [2, 32], strides = [1, 1]} : vector<2x96xf32> to vector<2x32xf32>
    %54 = vector.extract_strided_slice %52 {offsets = [0, 32], sizes = [2, 32], strides = [1, 1]} : vector<2x96xf32> to vector<2x32xf32>
    %55 = vector.extract_strided_slice %52 {offsets = [0, 64], sizes = [2, 32], strides = [1, 1]} : vector<2x96xf32> to vector<2x32xf32>
    %56 = vector.extract_strided_slice %46 {offsets = [0, 96], sizes = [2, 32], strides = [1, 1]} : vector<2x128xf32> to vector<2x32xf32>
    %57 = math.tanh %56 : vector<2x32xf32>
    %58 = arith.mulf %54, %26 : vector<2x32xf32>
    %59 = arith.mulf %53, %57 : vector<2x32xf32>
    %60 = arith.addf %58, %59 : vector<2x32xf32>
    %61 = math.tanh %60 : vector<2x32xf32>
    %62 = arith.mulf %55, %61 : vector<2x32xf32>
    %63 = arith.index_cast %c0_i32 : i32 to index
    %c0_34 = arith.constant 0 : index
    %c0_35 = arith.constant 0 : index
    %64 = vector.load %arg7[%63, %c0_34, %c0_35] : memref<8x2x32xf32, #tpu.memory_space<vmem>>, vector<1x2x32xf32>
    %65 = vector.shape_cast %64 : vector<1x2x32xf32> to vector<2x32xf32>
    %66 = vector.shape_cast %62 : vector<2x32xf32> to vector<1x2x32xf32>
    tpu.vector_store %arg7[%63, %c0_34, %c0_35], %66 {strides = array<i32>} : memref<8x2x32xf32, #tpu.memory_space<vmem>>, vector<1x2x32xf32>,
    %c1_i32 = arith.constant 1 : i32
    %67 = vector.shape_cast %62 : vector<2x32xf32> to vector<2x1x32xf32>
    "tpu.trace_start"() <{level = 10 : i32, message = "nqh,nhk->nqk"}> : () -> ()
    %cst_36 = arith.constant dense<0.000000e+00> : vector<2x1x144xf32>
    %68 = tpu.matmul %67, %23, %cst_36 {dimension_numbers = #tpu.dot_dimension_numbers<[2], [1], [1], [2], [0, 0, 0, 1, 1, 2], [0], [0]>} : vector<2x1x32xf32>, vector<2x32x144xf32>, vector<2x1x144xf32> -> vector<2x1x144xf32>
    "tpu.trace_stop"() : () -> ()
    %69 = vector.extract_strided_slice %68 {offsets = [0, 0, 128], sizes = [2, 1, 16], strides = [1, 1, 1]} : vector<2x1x144xf32> to vector<2x1x16xf32>
    %70 = math.exp %69 : vector<2x1x16xf32>
    "tpu.trace_start"() <{level = 10 : i32, message = "nqp,npg->nqg"}> : () -> ()
    %cst_37 = arith.constant dense<0.000000e+00> : vector<2x1x128xf32>
    %71 = tpu.matmul %70, %13, %cst_37 {dimension_numbers = #tpu.dot_dimension_numbers<[2], [1], [1], [2], [0, 0, 0, 1, 1, 2], [0], [0]>} : vector<2x1x16xf32>, vector<2x16x128xf32>, vector<2x1x128xf32> -> vector<2x1x128xf32>
    "tpu.trace_stop"() : () -> ()
    %cst_38 = arith.constant dense<0.000000e+00> : vector<2x1xf32>
    %72 = vector.multi_reduction <add>, %70, %cst_38 [2] : vector<2x1x16xf32> to vector<2x1xf32>
    %73 = vector.shape_cast %72 : vector<2x1xf32> to vector<2x1x1xf32>
    %74 = tpu.reciprocal %73 : vector<2x1x1xf32> -> vector<2x1x1xf32>
    %c2_i32_39 = arith.constant 2 : i32
    %75 = arith.muli %c1_i32, %c2_i32_39 : i32
    %76 = tpu.assume_multiple %75, 2 : i32
    %77 = arith.index_cast %76 : i32 to index
    %c0_40 = arith.constant 0 : index
    %78 = vector.load %arg8[%77, %c0_40] : memref<16x128xf32, #tpu.memory_space<vmem>>, vector<2x128xf32>
    %79 = vector.extract_strided_slice %68 {offsets = [0, 0, 0], sizes = [2, 1, 128], strides = [1, 1, 1]} : vector<2x1x144xf32> to vector<2x1x128xf32>
    %80 = vector.shape_cast %79 : vector<2x1x128xf32> to vector<2x128xf32>
    %81 = arith.addf %78, %80 : vector<2x128xf32>
    %82 = vector.shape_cast %71 : vector<2x1x128xf32> to vector<2x128xf32>
    %83 = vector.shape_cast %74 : vector<2x1x1xf32> to vector<2x1xf32>
    %84 = vector.broadcast %83 : vector<2x1xf32> to vector<2x128xf32>
    %85 = arith.mulf %82, %84 : vector<2x128xf32>
    %86 = arith.addf %81, %85 : vector<2x128xf32>
    %87 = vector.extract_strided_slice %86 {offsets = [0, 0], sizes = [2, 96], strides = [1, 1]} : vector<2x128xf32> to vector<2x96xf32>
    %88 = arith.negf %87 : vector<2x96xf32>
    %89 = math.exp %88 : vector<2x96xf32>
    %cst_41 = arith.constant 1.000000e+00 : f32
    %90 = vector.broadcast %cst_41 : f32 to vector<2x96xf32>
    %91 = arith.addf %90, %89 : vector<2x96xf32>
    %92 = arith.divf %90, %91 : vector<2x96xf32>
    %93 = vector.extract_strided_slice %92 {offsets = [0, 0], sizes = [2, 32], strides = [1, 1]} : vector<2x96xf32> to vector<2x32xf32>
    %94 = vector.extract_strided_slice %92 {offsets = [0, 32], sizes = [2, 32], strides = [1, 1]} : vector<2x96xf32> to vector<2x32xf32>
    %95 = vector.extract_strided_slice %92 {offsets = [0, 64], sizes = [2, 32], strides = [1, 1]} : vector<2x96xf32> to vector<2x32xf32>
    %96 = vector.extract_strided_slice %86 {offsets = [0, 96], sizes = [2, 32], strides = [1, 1]} : vector<2x128xf32> to vector<2x32xf32>
    %97 = math.tanh %96 : vector<2x32xf32>
    %98 = arith.mulf %94, %60 : vector<2x32xf32>
    %99 = arith.mulf %93, %97 : vector<2x32xf32>
    %100 = arith.addf %98, %99 : vector<2x32xf32>
    %101 = math.tanh %100 : vector<2x32xf32>
    %102 = arith.mulf %95, %101 : vector<2x32xf32>
    %103 = arith.index_cast %c1_i32 : i32 to index
    %c0_42 = arith.constant 0 : index
    %c0_43 = arith.constant 0 : index
    %104 = vector.load %arg7[%103, %c0_42, %c0_43] : memref<8x2x32xf32, #tpu.memory_space<vmem>>, vector<1x2x32xf32>
    %105 = vector.shape_cast %104 : vector<1x2x32xf32> to vector<2x32xf32>
    %106 = vector.shape_cast %102 : vector<2x32xf32> to vector<1x2x32xf32>
    tpu.vector_store %arg7[%103, %c0_42, %c0_43], %106 {strides = array<i32>} : memref<8x2x32xf32, #tpu.memory_space<vmem>>, vector<1x2x32xf32>,
    %c2_i32_44 = arith.constant 2 : i32
    %107 = vector.shape_cast %102 : vector<2x32xf32> to vector<2x1x32xf32>
    "tpu.trace_start"() <{level = 10 : i32, message = "nqh,nhk->nqk"}> : () -> ()
    %cst_45 = arith.constant dense<0.000000e+00> : vector<2x1x144xf32>
    %108 = tpu.matmul %107, %23, %cst_45 {dimension_numbers = #tpu.dot_dimension_numbers<[2], [1], [1], [2], [0, 0, 0, 1, 1, 2], [0], [0]>} : vector<2x1x32xf32>, vector<2x32x144xf32>, vector<2x1x144xf32> -> vector<2x1x144xf32>
    "tpu.trace_stop"() : () -> ()
    %109 = vector.extract_strided_slice %108 {offsets = [0, 0, 128], sizes = [2, 1, 16], strides = [1, 1, 1]} : vector<2x1x144xf32> to vector<2x1x16xf32>
    %110 = math.exp %109 : vector<2x1x16xf32>
    "tpu.trace_start"() <{level = 10 : i32, message = "nqp,npg->nqg"}> : () -> ()
    %cst_46 = arith.constant dense<0.000000e+00> : vector<2x1x128xf32>
    %111 = tpu.matmul %110, %13, %cst_46 {dimension_numbers = #tpu.dot_dimension_numbers<[2], [1], [1], [2], [0, 0, 0, 1, 1, 2], [0], [0]>} : vector<2x1x16xf32>, vector<2x16x128xf32>, vector<2x1x128xf32> -> vector<2x1x128xf32>
    "tpu.trace_stop"() : () -> ()
    %cst_47 = arith.constant dense<0.000000e+00> : vector<2x1xf32>
    %112 = vector.multi_reduction <add>, %110, %cst_47 [2] : vector<2x1x16xf32> to vector<2x1xf32>
    %113 = vector.shape_cast %112 : vector<2x1xf32> to vector<2x1x1xf32>
    %114 = tpu.reciprocal %113 : vector<2x1x1xf32> -> vector<2x1x1xf32>
    %c2_i32_48 = arith.constant 2 : i32
    %115 = arith.muli %c2_i32_44, %c2_i32_48 : i32
    %116 = tpu.assume_multiple %115, 2 : i32
    %117 = arith.index_cast %116 : i32 to index
    %c0_49 = arith.constant 0 : index
    %118 = vector.load %arg8[%117, %c0_49] : memref<16x128xf32, #tpu.memory_space<vmem>>, vector<2x128xf32>
    %119 = vector.extract_strided_slice %108 {offsets = [0, 0, 0], sizes = [2, 1, 128], strides = [1, 1, 1]} : vector<2x1x144xf32> to vector<2x1x128xf32>
    %120 = vector.shape_cast %119 : vector<2x1x128xf32> to vector<2x128xf32>
    %121 = arith.addf %118, %120 : vector<2x128xf32>
    %122 = vector.shape_cast %111 : vector<2x1x128xf32> to vector<2x128xf32>
    %123 = vector.shape_cast %114 : vector<2x1x1xf32> to vector<2x1xf32>
    %124 = vector.broadcast %123 : vector<2x1xf32> to vector<2x128xf32>
    %125 = arith.mulf %122, %124 : vector<2x128xf32>
    %126 = arith.addf %121, %125 : vector<2x128xf32>
    %127 = vector.extract_strided_slice %126 {offsets = [0, 0], sizes = [2, 96], strides = [1, 1]} : vector<2x128xf32> to vector<2x96xf32>
    %128 = arith.negf %127 : vector<2x96xf32>
    %129 = math.exp %128 : vector<2x96xf32>
    %cst_50 = arith.constant 1.000000e+00 : f32
    %130 = vector.broadcast %cst_50 : f32 to vector<2x96xf32>
    %131 = arith.addf %130, %129 : vector<2x96xf32>
    %132 = arith.divf %130, %131 : vector<2x96xf32>
    %133 = vector.extract_strided_slice %132 {offsets = [0, 0], sizes = [2, 32], strides = [1, 1]} : vector<2x96xf32> to vector<2x32xf32>
    %134 = vector.extract_strided_slice %132 {offsets = [0, 32], sizes = [2, 32], strides = [1, 1]} : vector<2x96xf32> to vector<2x32xf32>
    %135 = vector.extract_strided_slice %132 {offsets = [0, 64], sizes = [2, 32], strides = [1, 1]} : vector<2x96xf32> to vector<2x32xf32>
    %136 = vector.extract_strided_slice %126 {offsets = [0, 96], sizes = [2, 32], strides = [1, 1]} : vector<2x128xf32> to vector<2x32xf32>
    %137 = math.tanh %136 : vector<2x32xf32>
    %138 = arith.mulf %134, %100 : vector<2x32xf32>
    %139 = arith.mulf %133, %137 : vector<2x32xf32>
    %140 = arith.addf %138, %139 : vector<2x32xf32>
    %141 = math.tanh %140 : vector<2x32xf32>
    %142 = arith.mulf %135, %141 : vector<2x32xf32>
    %143 = arith.index_cast %c2_i32_44 : i32 to index
    %c0_51 = arith.constant 0 : index
    %c0_52 = arith.constant 0 : index
    %144 = vector.load %arg7[%143, %c0_51, %c0_52] : memref<8x2x32xf32, #tpu.memory_space<vmem>>, vector<1x2x32xf32>
    %145 = vector.shape_cast %144 : vector<1x2x32xf32> to vector<2x32xf32>
    %146 = vector.shape_cast %142 : vector<2x32xf32> to vector<1x2x32xf32>
    tpu.vector_store %arg7[%143, %c0_51, %c0_52], %146 {strides = array<i32>} : memref<8x2x32xf32, #tpu.memory_space<vmem>>, vector<1x2x32xf32>,
    %c3_i32 = arith.constant 3 : i32
    %147 = vector.shape_cast %142 : vector<2x32xf32> to vector<2x1x32xf32>
    "tpu.trace_start"() <{level = 10 : i32, message = "nqh,nhk->nqk"}> : () -> ()
    %cst_53 = arith.constant dense<0.000000e+00> : vector<2x1x144xf32>
    %148 = tpu.matmul %147, %23, %cst_53 {dimension_numbers = #tpu.dot_dimension_numbers<[2], [1], [1], [2], [0, 0, 0, 1, 1, 2], [0], [0]>} : vector<2x1x32xf32>, vector<2x32x144xf32>, vector<2x1x144xf32> -> vector<2x1x144xf32>
    "tpu.trace_stop"() : () -> ()
    %149 = vector.extract_strided_slice %148 {offsets = [0, 0, 128], sizes = [2, 1, 16], strides = [1, 1, 1]} : vector<2x1x144xf32> to vector<2x1x16xf32>
    %150 = math.exp %149 : vector<2x1x16xf32>
    "tpu.trace_start"() <{level = 10 : i32, message = "nqp,npg->nqg"}> : () -> ()
    %cst_54 = arith.constant dense<0.000000e+00> : vector<2x1x128xf32>
    %151 = tpu.matmul %150, %13, %cst_54 {dimension_numbers = #tpu.dot_dimension_numbers<[2], [1], [1], [2], [0, 0, 0, 1, 1, 2], [0], [0]>} : vector<2x1x16xf32>, vector<2x16x128xf32>, vector<2x1x128xf32> -> vector<2x1x128xf32>
    "tpu.trace_stop"() : () -> ()
    %cst_55 = arith.constant dense<0.000000e+00> : vector<2x1xf32>
    %152 = vector.multi_reduction <add>, %150, %cst_55 [2] : vector<2x1x16xf32> to vector<2x1xf32>
    %153 = vector.shape_cast %152 : vector<2x1xf32> to vector<2x1x1xf32>
    %154 = tpu.reciprocal %153 : vector<2x1x1xf32> -> vector<2x1x1xf32>
    %c2_i32_56 = arith.constant 2 : i32
    %155 = arith.muli %c3_i32, %c2_i32_56 : i32
    %156 = tpu.assume_multiple %155, 2 : i32
    %157 = arith.index_cast %156 : i32 to index
    %c0_57 = arith.constant 0 : index
    %158 = vector.load %arg8[%157, %c0_57] : memref<16x128xf32, #tpu.memory_space<vmem>>, vector<2x128xf32>
    %159 = vector.extract_strided_slice %148 {offsets = [0, 0, 0], sizes = [2, 1, 128], strides = [1, 1, 1]} : vector<2x1x144xf32> to vector<2x1x128xf32>
    %160 = vector.shape_cast %159 : vector<2x1x128xf32> to vector<2x128xf32>
    %161 = arith.addf %158, %160 : vector<2x128xf32>
    %162 = vector.shape_cast %151 : vector<2x1x128xf32> to vector<2x128xf32>
    %163 = vector.shape_cast %154 : vector<2x1x1xf32> to vector<2x1xf32>
    %164 = vector.broadcast %163 : vector<2x1xf32> to vector<2x128xf32>
    %165 = arith.mulf %162, %164 : vector<2x128xf32>
    %166 = arith.addf %161, %165 : vector<2x128xf32>
    %167 = vector.extract_strided_slice %166 {offsets = [0, 0], sizes = [2, 96], strides = [1, 1]} : vector<2x128xf32> to vector<2x96xf32>
    %168 = arith.negf %167 : vector<2x96xf32>
    %169 = math.exp %168 : vector<2x96xf32>
    %cst_58 = arith.constant 1.000000e+00 : f32
    %170 = vector.broadcast %cst_58 : f32 to vector<2x96xf32>
    %171 = arith.addf %170, %169 : vector<2x96xf32>
    %172 = arith.divf %170, %171 : vector<2x96xf32>
    %173 = vector.extract_strided_slice %172 {offsets = [0, 0], sizes = [2, 32], strides = [1, 1]} : vector<2x96xf32> to vector<2x32xf32>
    %174 = vector.extract_strided_slice %172 {offsets = [0, 32], sizes = [2, 32], strides = [1, 1]} : vector<2x96xf32> to vector<2x32xf32>
    %175 = vector.extract_strided_slice %172 {offsets = [0, 64], sizes = [2, 32], strides = [1, 1]} : vector<2x96xf32> to vector<2x32xf32>
    %176 = vector.extract_strided_slice %166 {offsets = [0, 96], sizes = [2, 32], strides = [1, 1]} : vector<2x128xf32> to vector<2x32xf32>
    %177 = math.tanh %176 : vector<2x32xf32>
    %178 = arith.mulf %174, %140 : vector<2x32xf32>
    %179 = arith.mulf %173, %177 : vector<2x32xf32>
    %180 = arith.addf %178, %179 : vector<2x32xf32>
    %181 = math.tanh %180 : vector<2x32xf32>
    %182 = arith.mulf %175, %181 : vector<2x32xf32>
    %183 = arith.index_cast %c3_i32 : i32 to index
    %c0_59 = arith.constant 0 : index
    %c0_60 = arith.constant 0 : index
    %184 = vector.load %arg7[%183, %c0_59, %c0_60] : memref<8x2x32xf32, #tpu.memory_space<vmem>>, vector<1x2x32xf32>
    %185 = vector.shape_cast %184 : vector<1x2x32xf32> to vector<2x32xf32>
    %186 = vector.shape_cast %182 : vector<2x32xf32> to vector<1x2x32xf32>
    tpu.vector_store %arg7[%183, %c0_59, %c0_60], %186 {strides = array<i32>} : memref<8x2x32xf32, #tpu.memory_space<vmem>>, vector<1x2x32xf32>,
    %c4_i32 = arith.constant 4 : i32
    %187 = vector.shape_cast %182 : vector<2x32xf32> to vector<2x1x32xf32>
    "tpu.trace_start"() <{level = 10 : i32, message = "nqh,nhk->nqk"}> : () -> ()
    %cst_61 = arith.constant dense<0.000000e+00> : vector<2x1x144xf32>
    %188 = tpu.matmul %187, %23, %cst_61 {dimension_numbers = #tpu.dot_dimension_numbers<[2], [1], [1], [2], [0, 0, 0, 1, 1, 2], [0], [0]>} : vector<2x1x32xf32>, vector<2x32x144xf32>, vector<2x1x144xf32> -> vector<2x1x144xf32>
    "tpu.trace_stop"() : () -> ()
    %189 = vector.extract_strided_slice %188 {offsets = [0, 0, 128], sizes = [2, 1, 16], strides = [1, 1, 1]} : vector<2x1x144xf32> to vector<2x1x16xf32>
    %190 = math.exp %189 : vector<2x1x16xf32>
    "tpu.trace_start"() <{level = 10 : i32, message = "nqp,npg->nqg"}> : () -> ()
    %cst_62 = arith.constant dense<0.000000e+00> : vector<2x1x128xf32>
    %191 = tpu.matmul %190, %13, %cst_62 {dimension_numbers = #tpu.dot_dimension_numbers<[2], [1], [1], [2], [0, 0, 0, 1, 1, 2], [0], [0]>} : vector<2x1x16xf32>, vector<2x16x128xf32>, vector<2x1x128xf32> -> vector<2x1x128xf32>
    "tpu.trace_stop"() : () -> ()
    %cst_63 = arith.constant dense<0.000000e+00> : vector<2x1xf32>
    %192 = vector.multi_reduction <add>, %190, %cst_63 [2] : vector<2x1x16xf32> to vector<2x1xf32>
    %193 = vector.shape_cast %192 : vector<2x1xf32> to vector<2x1x1xf32>
    %194 = tpu.reciprocal %193 : vector<2x1x1xf32> -> vector<2x1x1xf32>
    %c2_i32_64 = arith.constant 2 : i32
    %195 = arith.muli %c4_i32, %c2_i32_64 : i32
    %196 = tpu.assume_multiple %195, 2 : i32
    %197 = arith.index_cast %196 : i32 to index
    %c0_65 = arith.constant 0 : index
    %198 = vector.load %arg8[%197, %c0_65] : memref<16x128xf32, #tpu.memory_space<vmem>>, vector<2x128xf32>
    %199 = vector.extract_strided_slice %188 {offsets = [0, 0, 0], sizes = [2, 1, 128], strides = [1, 1, 1]} : vector<2x1x144xf32> to vector<2x1x128xf32>
    %200 = vector.shape_cast %199 : vector<2x1x128xf32> to vector<2x128xf32>
    %201 = arith.addf %198, %200 : vector<2x128xf32>
    %202 = vector.shape_cast %191 : vector<2x1x128xf32> to vector<2x128xf32>
    %203 = vector.shape_cast %194 : vector<2x1x1xf32> to vector<2x1xf32>
    %204 = vector.broadcast %203 : vector<2x1xf32> to vector<2x128xf32>
    %205 = arith.mulf %202, %204 : vector<2x128xf32>
    %206 = arith.addf %201, %205 : vector<2x128xf32>
    %207 = vector.extract_strided_slice %206 {offsets = [0, 0], sizes = [2, 96], strides = [1, 1]} : vector<2x128xf32> to vector<2x96xf32>
    %208 = arith.negf %207 : vector<2x96xf32>
    %209 = math.exp %208 : vector<2x96xf32>
    %cst_66 = arith.constant 1.000000e+00 : f32
    %210 = vector.broadcast %cst_66 : f32 to vector<2x96xf32>
    %211 = arith.addf %210, %209 : vector<2x96xf32>
    %212 = arith.divf %210, %211 : vector<2x96xf32>
    %213 = vector.extract_strided_slice %212 {offsets = [0, 0], sizes = [2, 32], strides = [1, 1]} : vector<2x96xf32> to vector<2x32xf32>
    %214 = vector.extract_strided_slice %212 {offsets = [0, 32], sizes = [2, 32], strides = [1, 1]} : vector<2x96xf32> to vector<2x32xf32>
    %215 = vector.extract_strided_slice %212 {offsets = [0, 64], sizes = [2, 32], strides = [1, 1]} : vector<2x96xf32> to vector<2x32xf32>
    %216 = vector.extract_strided_slice %206 {offsets = [0, 96], sizes = [2, 32], strides = [1, 1]} : vector<2x128xf32> to vector<2x32xf32>
    %217 = math.tanh %216 : vector<2x32xf32>
    %218 = arith.mulf %214, %180 : vector<2x32xf32>
    %219 = arith.mulf %213, %217 : vector<2x32xf32>
    %220 = arith.addf %218, %219 : vector<2x32xf32>
    %221 = math.tanh %220 : vector<2x32xf32>
    %222 = arith.mulf %215, %221 : vector<2x32xf32>
    %223 = arith.index_cast %c4_i32 : i32 to index
    %c0_67 = arith.constant 0 : index
    %c0_68 = arith.constant 0 : index
    %224 = vector.load %arg7[%223, %c0_67, %c0_68] : memref<8x2x32xf32, #tpu.memory_space<vmem>>, vector<1x2x32xf32>
    %225 = vector.shape_cast %224 : vector<1x2x32xf32> to vector<2x32xf32>
    %226 = vector.shape_cast %222 : vector<2x32xf32> to vector<1x2x32xf32>
    tpu.vector_store %arg7[%223, %c0_67, %c0_68], %226 {strides = array<i32>} : memref<8x2x32xf32, #tpu.memory_space<vmem>>, vector<1x2x32xf32>,
    %c5_i32 = arith.constant 5 : i32
    %227 = vector.shape_cast %222 : vector<2x32xf32> to vector<2x1x32xf32>
    "tpu.trace_start"() <{level = 10 : i32, message = "nqh,nhk->nqk"}> : () -> ()
    %cst_69 = arith.constant dense<0.000000e+00> : vector<2x1x144xf32>
    %228 = tpu.matmul %227, %23, %cst_69 {dimension_numbers = #tpu.dot_dimension_numbers<[2], [1], [1], [2], [0, 0, 0, 1, 1, 2], [0], [0]>} : vector<2x1x32xf32>, vector<2x32x144xf32>, vector<2x1x144xf32> -> vector<2x1x144xf32>
    "tpu.trace_stop"() : () -> ()
    %229 = vector.extract_strided_slice %228 {offsets = [0, 0, 128], sizes = [2, 1, 16], strides = [1, 1, 1]} : vector<2x1x144xf32> to vector<2x1x16xf32>
    %230 = math.exp %229 : vector<2x1x16xf32>
    "tpu.trace_start"() <{level = 10 : i32, message = "nqp,npg->nqg"}> : () -> ()
    %cst_70 = arith.constant dense<0.000000e+00> : vector<2x1x128xf32>
    %231 = tpu.matmul %230, %13, %cst_70 {dimension_numbers = #tpu.dot_dimension_numbers<[2], [1], [1], [2], [0, 0, 0, 1, 1, 2], [0], [0]>} : vector<2x1x16xf32>, vector<2x16x128xf32>, vector<2x1x128xf32> -> vector<2x1x128xf32>
    "tpu.trace_stop"() : () -> ()
    %cst_71 = arith.constant dense<0.000000e+00> : vector<2x1xf32>
    %232 = vector.multi_reduction <add>, %230, %cst_71 [2] : vector<2x1x16xf32> to vector<2x1xf32>
    %233 = vector.shape_cast %232 : vector<2x1xf32> to vector<2x1x1xf32>
    %234 = tpu.reciprocal %233 : vector<2x1x1xf32> -> vector<2x1x1xf32>
    %c2_i32_72 = arith.constant 2 : i32
    %235 = arith.muli %c5_i32, %c2_i32_72 : i32
    %236 = tpu.assume_multiple %235, 2 : i32
    %237 = arith.index_cast %236 : i32 to index
    %c0_73 = arith.constant 0 : index
    %238 = vector.load %arg8[%237, %c0_73] : memref<16x128xf32, #tpu.memory_space<vmem>>, vector<2x128xf32>
    %239 = vector.extract_strided_slice %228 {offsets = [0, 0, 0], sizes = [2, 1, 128], strides = [1, 1, 1]} : vector<2x1x144xf32> to vector<2x1x128xf32>
    %240 = vector.shape_cast %239 : vector<2x1x128xf32> to vector<2x128xf32>
    %241 = arith.addf %238, %240 : vector<2x128xf32>
    %242 = vector.shape_cast %231 : vector<2x1x128xf32> to vector<2x128xf32>
    %243 = vector.shape_cast %234 : vector<2x1x1xf32> to vector<2x1xf32>
    %244 = vector.broadcast %243 : vector<2x1xf32> to vector<2x128xf32>
    %245 = arith.mulf %242, %244 : vector<2x128xf32>
    %246 = arith.addf %241, %245 : vector<2x128xf32>
    %247 = vector.extract_strided_slice %246 {offsets = [0, 0], sizes = [2, 96], strides = [1, 1]} : vector<2x128xf32> to vector<2x96xf32>
    %248 = arith.negf %247 : vector<2x96xf32>
    %249 = math.exp %248 : vector<2x96xf32>
    %cst_74 = arith.constant 1.000000e+00 : f32
    %250 = vector.broadcast %cst_74 : f32 to vector<2x96xf32>
    %251 = arith.addf %250, %249 : vector<2x96xf32>
    %252 = arith.divf %250, %251 : vector<2x96xf32>
    %253 = vector.extract_strided_slice %252 {offsets = [0, 0], sizes = [2, 32], strides = [1, 1]} : vector<2x96xf32> to vector<2x32xf32>
    %254 = vector.extract_strided_slice %252 {offsets = [0, 32], sizes = [2, 32], strides = [1, 1]} : vector<2x96xf32> to vector<2x32xf32>
    %255 = vector.extract_strided_slice %252 {offsets = [0, 64], sizes = [2, 32], strides = [1, 1]} : vector<2x96xf32> to vector<2x32xf32>
    %256 = vector.extract_strided_slice %246 {offsets = [0, 96], sizes = [2, 32], strides = [1, 1]} : vector<2x128xf32> to vector<2x32xf32>
    %257 = math.tanh %256 : vector<2x32xf32>
    %258 = arith.mulf %254, %220 : vector<2x32xf32>
    %259 = arith.mulf %253, %257 : vector<2x32xf32>
    %260 = arith.addf %258, %259 : vector<2x32xf32>
    %261 = math.tanh %260 : vector<2x32xf32>
    %262 = arith.mulf %255, %261 : vector<2x32xf32>
    %263 = arith.index_cast %c5_i32 : i32 to index
    %c0_75 = arith.constant 0 : index
    %c0_76 = arith.constant 0 : index
    %264 = vector.load %arg7[%263, %c0_75, %c0_76] : memref<8x2x32xf32, #tpu.memory_space<vmem>>, vector<1x2x32xf32>
    %265 = vector.shape_cast %264 : vector<1x2x32xf32> to vector<2x32xf32>
    %266 = vector.shape_cast %262 : vector<2x32xf32> to vector<1x2x32xf32>
    tpu.vector_store %arg7[%263, %c0_75, %c0_76], %266 {strides = array<i32>} : memref<8x2x32xf32, #tpu.memory_space<vmem>>, vector<1x2x32xf32>,
    %c6_i32 = arith.constant 6 : i32
    %267 = vector.shape_cast %262 : vector<2x32xf32> to vector<2x1x32xf32>
    "tpu.trace_start"() <{level = 10 : i32, message = "nqh,nhk->nqk"}> : () -> ()
    %cst_77 = arith.constant dense<0.000000e+00> : vector<2x1x144xf32>
    %268 = tpu.matmul %267, %23, %cst_77 {dimension_numbers = #tpu.dot_dimension_numbers<[2], [1], [1], [2], [0, 0, 0, 1, 1, 2], [0], [0]>} : vector<2x1x32xf32>, vector<2x32x144xf32>, vector<2x1x144xf32> -> vector<2x1x144xf32>
    "tpu.trace_stop"() : () -> ()
    %269 = vector.extract_strided_slice %268 {offsets = [0, 0, 128], sizes = [2, 1, 16], strides = [1, 1, 1]} : vector<2x1x144xf32> to vector<2x1x16xf32>
    %270 = math.exp %269 : vector<2x1x16xf32>
    "tpu.trace_start"() <{level = 10 : i32, message = "nqp,npg->nqg"}> : () -> ()
    %cst_78 = arith.constant dense<0.000000e+00> : vector<2x1x128xf32>
    %271 = tpu.matmul %270, %13, %cst_78 {dimension_numbers = #tpu.dot_dimension_numbers<[2], [1], [1], [2], [0, 0, 0, 1, 1, 2], [0], [0]>} : vector<2x1x16xf32>, vector<2x16x128xf32>, vector<2x1x128xf32> -> vector<2x1x128xf32>
    "tpu.trace_stop"() : () -> ()
    %cst_79 = arith.constant dense<0.000000e+00> : vector<2x1xf32>
    %272 = vector.multi_reduction <add>, %270, %cst_79 [2] : vector<2x1x16xf32> to vector<2x1xf32>
    %273 = vector.shape_cast %272 : vector<2x1xf32> to vector<2x1x1xf32>
    %274 = tpu.reciprocal %273 : vector<2x1x1xf32> -> vector<2x1x1xf32>
    %c2_i32_80 = arith.constant 2 : i32
    %275 = arith.muli %c6_i32, %c2_i32_80 : i32
    %276 = tpu.assume_multiple %275, 2 : i32
    %277 = arith.index_cast %276 : i32 to index
    %c0_81 = arith.constant 0 : index
    %278 = vector.load %arg8[%277, %c0_81] : memref<16x128xf32, #tpu.memory_space<vmem>>, vector<2x128xf32>
    %279 = vector.extract_strided_slice %268 {offsets = [0, 0, 0], sizes = [2, 1, 128], strides = [1, 1, 1]} : vector<2x1x144xf32> to vector<2x1x128xf32>
    %280 = vector.shape_cast %279 : vector<2x1x128xf32> to vector<2x128xf32>
    %281 = arith.addf %278, %280 : vector<2x128xf32>
    %282 = vector.shape_cast %271 : vector<2x1x128xf32> to vector<2x128xf32>
    %283 = vector.shape_cast %274 : vector<2x1x1xf32> to vector<2x1xf32>
    %284 = vector.broadcast %283 : vector<2x1xf32> to vector<2x128xf32>
    %285 = arith.mulf %282, %284 : vector<2x128xf32>
    %286 = arith.addf %281, %285 : vector<2x128xf32>
    %287 = vector.extract_strided_slice %286 {offsets = [0, 0], sizes = [2, 96], strides = [1, 1]} : vector<2x128xf32> to vector<2x96xf32>
    %288 = arith.negf %287 : vector<2x96xf32>
    %289 = math.exp %288 : vector<2x96xf32>
    %cst_82 = arith.constant 1.000000e+00 : f32
    %290 = vector.broadcast %cst_82 : f32 to vector<2x96xf32>
    %291 = arith.addf %290, %289 : vector<2x96xf32>
    %292 = arith.divf %290, %291 : vector<2x96xf32>
    %293 = vector.extract_strided_slice %292 {offsets = [0, 0], sizes = [2, 32], strides = [1, 1]} : vector<2x96xf32> to vector<2x32xf32>
    %294 = vector.extract_strided_slice %292 {offsets = [0, 32], sizes = [2, 32], strides = [1, 1]} : vector<2x96xf32> to vector<2x32xf32>
    %295 = vector.extract_strided_slice %292 {offsets = [0, 64], sizes = [2, 32], strides = [1, 1]} : vector<2x96xf32> to vector<2x32xf32>
    %296 = vector.extract_strided_slice %286 {offsets = [0, 96], sizes = [2, 32], strides = [1, 1]} : vector<2x128xf32> to vector<2x32xf32>
    %297 = math.tanh %296 : vector<2x32xf32>
    %298 = arith.mulf %294, %260 : vector<2x32xf32>
    %299 = arith.mulf %293, %297 : vector<2x32xf32>
    %300 = arith.addf %298, %299 : vector<2x32xf32>
    %301 = math.tanh %300 : vector<2x32xf32>
    %302 = arith.mulf %295, %301 : vector<2x32xf32>
    %303 = arith.index_cast %c6_i32 : i32 to index
    %c0_83 = arith.constant 0 : index
    %c0_84 = arith.constant 0 : index
    %304 = vector.load %arg7[%303, %c0_83, %c0_84] : memref<8x2x32xf32, #tpu.memory_space<vmem>>, vector<1x2x32xf32>
    %305 = vector.shape_cast %304 : vector<1x2x32xf32> to vector<2x32xf32>
    %306 = vector.shape_cast %302 : vector<2x32xf32> to vector<1x2x32xf32>
    tpu.vector_store %arg7[%303, %c0_83, %c0_84], %306 {strides = array<i32>} : memref<8x2x32xf32, #tpu.memory_space<vmem>>, vector<1x2x32xf32>,
    %c7_i32 = arith.constant 7 : i32
    %307 = vector.shape_cast %302 : vector<2x32xf32> to vector<2x1x32xf32>
    "tpu.trace_start"() <{level = 10 : i32, message = "nqh,nhk->nqk"}> : () -> ()
    %cst_85 = arith.constant dense<0.000000e+00> : vector<2x1x144xf32>
    %308 = tpu.matmul %307, %23, %cst_85 {dimension_numbers = #tpu.dot_dimension_numbers<[2], [1], [1], [2], [0, 0, 0, 1, 1, 2], [0], [0]>} : vector<2x1x32xf32>, vector<2x32x144xf32>, vector<2x1x144xf32> -> vector<2x1x144xf32>
    "tpu.trace_stop"() : () -> ()
    %309 = vector.extract_strided_slice %308 {offsets = [0, 0, 128], sizes = [2, 1, 16], strides = [1, 1, 1]} : vector<2x1x144xf32> to vector<2x1x16xf32>
    %310 = math.exp %309 : vector<2x1x16xf32>
    "tpu.trace_start"() <{level = 10 : i32, message = "nqp,npg->nqg"}> : () -> ()
    %cst_86 = arith.constant dense<0.000000e+00> : vector<2x1x128xf32>
    %311 = tpu.matmul %310, %13, %cst_86 {dimension_numbers = #tpu.dot_dimension_numbers<[2], [1], [1], [2], [0, 0, 0, 1, 1, 2], [0], [0]>} : vector<2x1x16xf32>, vector<2x16x128xf32>, vector<2x1x128xf32> -> vector<2x1x128xf32>
    "tpu.trace_stop"() : () -> ()
    %cst_87 = arith.constant dense<0.000000e+00> : vector<2x1xf32>
    %312 = vector.multi_reduction <add>, %310, %cst_87 [2] : vector<2x1x16xf32> to vector<2x1xf32>
    %313 = vector.shape_cast %312 : vector<2x1xf32> to vector<2x1x1xf32>
    %314 = tpu.reciprocal %313 : vector<2x1x1xf32> -> vector<2x1x1xf32>
    %c2_i32_88 = arith.constant 2 : i32
    %315 = arith.muli %c7_i32, %c2_i32_88 : i32
    %316 = tpu.assume_multiple %315, 2 : i32
    %317 = arith.index_cast %316 : i32 to index
    %c0_89 = arith.constant 0 : index
    %318 = vector.load %arg8[%317, %c0_89] : memref<16x128xf32, #tpu.memory_space<vmem>>, vector<2x128xf32>
    %319 = vector.extract_strided_slice %308 {offsets = [0, 0, 0], sizes = [2, 1, 128], strides = [1, 1, 1]} : vector<2x1x144xf32> to vector<2x1x128xf32>
    %320 = vector.shape_cast %319 : vector<2x1x128xf32> to vector<2x128xf32>
    %321 = arith.addf %318, %320 : vector<2x128xf32>
    %322 = vector.shape_cast %311 : vector<2x1x128xf32> to vector<2x128xf32>
    %323 = vector.shape_cast %314 : vector<2x1x1xf32> to vector<2x1xf32>
    %324 = vector.broadcast %323 : vector<2x1xf32> to vector<2x128xf32>
    %325 = arith.mulf %322, %324 : vector<2x128xf32>
    %326 = arith.addf %321, %325 : vector<2x128xf32>
    %327 = vector.extract_strided_slice %326 {offsets = [0, 0], sizes = [2, 96], strides = [1, 1]} : vector<2x128xf32> to vector<2x96xf32>
    %328 = arith.negf %327 : vector<2x96xf32>
    %329 = math.exp %328 : vector<2x96xf32>
    %cst_90 = arith.constant 1.000000e+00 : f32
    %330 = vector.broadcast %cst_90 : f32 to vector<2x96xf32>
    %331 = arith.addf %330, %329 : vector<2x96xf32>
    %332 = arith.divf %330, %331 : vector<2x96xf32>
    %333 = vector.extract_strided_slice %332 {offsets = [0, 0], sizes = [2, 32], strides = [1, 1]} : vector<2x96xf32> to vector<2x32xf32>
    %334 = vector.extract_strided_slice %332 {offsets = [0, 32], sizes = [2, 32], strides = [1, 1]} : vector<2x96xf32> to vector<2x32xf32>
    %335 = vector.extract_strided_slice %332 {offsets = [0, 64], sizes = [2, 32], strides = [1, 1]} : vector<2x96xf32> to vector<2x32xf32>
    %336 = vector.extract_strided_slice %326 {offsets = [0, 96], sizes = [2, 32], strides = [1, 1]} : vector<2x128xf32> to vector<2x32xf32>
    %337 = math.tanh %336 : vector<2x32xf32>
    %338 = arith.mulf %334, %300 : vector<2x32xf32>
    %339 = arith.mulf %333, %337 : vector<2x32xf32>
    %340 = arith.addf %338, %339 : vector<2x32xf32>
    %341 = math.tanh %340 : vector<2x32xf32>
    %342 = arith.mulf %335, %341 : vector<2x32xf32>
    %343 = arith.index_cast %c7_i32 : i32 to index
    %c0_91 = arith.constant 0 : index
    %c0_92 = arith.constant 0 : index
    %344 = vector.load %arg7[%343, %c0_91, %c0_92] : memref<8x2x32xf32, #tpu.memory_space<vmem>>, vector<1x2x32xf32>
    %345 = vector.shape_cast %344 : vector<1x2x32xf32> to vector<2x32xf32>
    %346 = vector.shape_cast %342 : vector<2x32xf32> to vector<1x2x32xf32>
    tpu.vector_store %arg7[%343, %c0_91, %c0_92], %346 {strides = array<i32>} : memref<8x2x32xf32, #tpu.memory_space<vmem>>, vector<1x2x32xf32>,
    %c8_i32 = arith.constant 8 : i32
    return
  }
}

</mosaic_0001>

<bundles_post_ra>
// kernel: attention_lstm_forward.1
= control target key start
LH: loop header
LB: loop body
LE: loop exit
PB: predicated region body
PF: predicated region fallthrough
CT: control target
= control target key end

     0   :  { %v2303_v2 = vmov 16.0   ;;  %vm74_vm0 = vcmask 261120   ;;  %vm38_vm1 = vcmask 130048   ;;  %vm348_vm3 = vcmask 122880   ;;  %s2305_s21 = smov 64   ;;  %s2899_s5 = inlined_call_operand.vmem [shape: f32[32,128], index: 5, kind: input, shape index: {}]   ;;  %s2900_s3 = inlined_call_operand.vmem [shape: f32[16,128], index: 3, kind: input, shape index: {}]   ;;  %s2901_s1 = inlined_call_operand.vmem [shape: f32[2,16,32], index: 1, kind: input, shape index: {}]   ;;  %s2902_s0 = inlined_call_operand.vmem [shape: f32[16,16], index: 0, kind: input, shape index: {}]   ;;  %s2903_s4 = inlined_call_operand.vmem [shape: f32[32,128], index: 4, kind: input, shape index: {}]   ;;  %s2904_s2 = inlined_call_operand.vmem [shape: f32[2,32,16], index: 2, kind: input, shape index: {}]   ;;  %s2905_s6 = inlined_call_operand.vmem [shape: f32[1,128], index: 6, kind: input, shape index: {}]   ;;  %s2906_s7 = inlined_call_operand.vmem [shape: f32[8,2,32], index: 7, kind: output, shape index: {}]  }
   0x1   :  { %v73_v0 = vld [vmem:[%s2899_s5 + $0x18] sm:$0xff]  ;;  %v72_v1 = vld [vmem:[%s2899_s5 + $0x10] sm:$0xff]  ;;  %2161 = vrcp.f32 %v2303_v2  ;;  %v71_v3 = vld [vmem:[%s2899_s5 + $0x8] sm:$0xff]  ;;  %vm387_vm9 = vcmask 1041409  }
   0x2   :  { %93 = vmatpush.msra.mxu1 %v73_v0  ;;  %122 = vmatpush.msra.mxu2 %v73_v0  ;;  %v33_v4 = vld [vmem:[%s2900_s3 + $0x8] sm:$0xff]  ;;  %v32_v5 = vld [vmem:[%s2900_s3] sm:$0xff]  ;;  %v2370_v8 = vld [vmem:[%s2903_s4 + $0x18] sm:$0xff] }
   0x3   :  { %59 = vmatpush.msra.mxu0 %v33_v4  ;;  %v26_v6 = vld [vmem:[%s2901_s1] sm:$0xff]  ;;  %140 = vst [vmem:[#allocation3 + $0x30] sm:$0xff] %v2370_v8  ;;  %v152_v9 = vld [vmem:[%s2904_s2 + $0x38] sm:$0xff]  ;;  %v28_v10 = vld [vmem:[%s2901_s1 + $0x10] sm:$0xff]  ;;  %227 = vmatpush.msra.mxu3 %v2370_v8 }
   0x4   :  { %v30_v7 = vld [vmem:[%s2902_s0] sm:$0xff]  ;;  %94 = vmatpush.msra.mxu1 %v72_v1  ;;  %123 = vmatpush.msra.mxu2 %v72_v1  ;;  %v2382_v11 = vld [vmem:[%s2903_s4 + $0x10] sm:$0xff]  ;;  %v185_v13 = vsel %vm74_vm0, %v26_v6, 0.0  ;;  %v160_v14 = vmul.f32 0.17677669, %v152_v9  ;;  %v194_v16 = vsel %vm74_vm0, %v28_v10, 0.0 }
   0x5   :  { %v70_v12 = vld [vmem:[%s2899_s5] sm:$0xff]  ;;  %60 = vmatpush.msra.mxu0 %v32_v5  ;;  %v151_v15 = vld [vmem:[%s2904_s2 + $0x30] sm:$0xff]  ;;  %139 = vst [vmem:[#allocation3 + $0x20] sm:$0xff] %v2382_v11  ;;  %v2398_v17 = vld [vmem:[%s2903_s4 + $0x8] sm:$0xff]  ;;  %228 = vmatpush.msra.mxu3 %v2382_v11 }
   0x6   :  { %95 = vmatpush.msra.mxu1 %v71_v3  ;;  %2088 = vmatmul.msk.f32.vlgmr.msra.gmra.mxu0 %vm38_vm1, %v30_v7  ;;  %v27_v18 = vld [vmem:[%s2901_s1 + $0x8] sm:$0xff]  ;;  %168 = vst.msk [vmem:[#allocation3 + $0x78] sm:$0xff] %vm38_vm1, %v160_v14  ;;  %v159_v20 = vmul.f32 0.17677669, %v151_v15  ;;  %v148_v22 = vld [vmem:[%s2904_s2 + $0x18] sm:$0xff]  ;;  %v2427_v28 = vld [vmem:[%s2903_s4] sm:$0xff] }
   0x7   :  { %v2403_v19 = vpop.eup %2161  ;;  %124 = vmatpush.msra.mxu2 %v71_v3  ;;  %v186_v21 = vsel %vm74_vm0, %v27_v18, 0.0  ;;  %v29_v23 = vld [vmem:[%s2901_s1 + $0x18] sm:$0xff]  ;;  %270 = vmatpush.msrb.mxu0 %v2370_v8  ;;  %v150_v26 = vld [vmem:[%s2904_s2 + $0x28] sm:$0xff]  ;;  %138 = vst [vmem:[#allocation3 + $0x10] sm:$0xff] %v2398_v17  ;;  %v147_v30 = vld [vmem:[%s2904_s2 + $0x10] sm:$0xff] }
   0x8   :  { %96 = vmatpush.msra.mxu1 %v70_v12  ;;  %v187_v24 = vadd.f32 %v186_v21, %v185_v13  ;;  %v204_v25 = vmul.f32 16.0, %v2403_v19  ;;  %v31_v27 = vld [vmem:[%s2902_s0 + $0x8] sm:$0xff]  ;;  %v195_v29 = vsel %vm74_vm0, %v29_v23, 0.0  ;;  %229 = vmatpush.msra.mxu3 %v2398_v17  ;;  %v156_v33 = vmul.f32 0.17677669, %v148_v22  ;;  %167 = vst.msk [vmem:[#allocation3 + $0x68] sm:$0xff] %vm38_vm1, %v159_v20 }
   0x9   :  { %2090 = vmatmul.msk.f32.vlgmr.msra.gmra.mxu1 %vm74_vm0, %v26_v6  ;;  %125 = vmatpush.msra.mxu2 %v70_v12  ;;  %v196_v34 = vadd.f32 %v195_v29, %v194_v16  ;;  %v146_v35 = vld [vmem:[%s2904_s2 + $0x8] sm:$0xff]  ;;  %v158_v36 = vmul.f32 0.17677669, %v150_v26  ;;  %v149_v37 = vld [vmem:[%s2904_s2 + $0x20] sm:$0xff]  ;;  %137 = vst [vmem:[#allocation3] sm:$0xff] %v2427_v28  ;;  %vm208_vm2 = vweird.f32 %v2403_v19 }
   0xa   :  { %2092 = vmatmul.msk.f32.vlgmr.msra.gmra.mxu2 %vm74_vm0, %v28_v10  ;;  %v188_v31 = vrot.slane %v187_v24, 4  ;;  %v205_v32 = vsub.f32 1.0, %v204_v25  ;;  %271 = vmatpush.msrb.mxu0 %v2382_v11  ;;  %v155_v41 = vmul.f32 0.17677669, %v147_v30  ;;  %v145_v42 = vld [vmem:[%s2904_s2] sm:$0xff]  ;;  %164 = vst.msk [vmem:[#allocation3 + $0x38] sm:$0xff] %vm38_vm1, %v156_v33 }
   0xb   :  { %230 = vmatpush.msra.mxu3 %v2427_v28  ;;  %v197_v40 = vrot.slane %v196_v34, 4  ;;  %v154_v43 = vmul.f32 0.17677669, %v146_v35  ;;  %v157_v47 = vmul.f32 0.17677669, %v149_v37  ;;  %166 = vst.msk [vmem:[#allocation3 + $0x58] sm:$0xff] %vm38_vm1, %v158_v36 }
   0xc   :  { %v189_v38 = vadd.f32 %v188_v31, %v187_v24  ;;  %v206_v39 = vmul.f32 %v2403_v19, %v205_v32  ;;  %272 = vmatpush.msrb.mxu0 %v2398_v17  ;;  %v153_v49 = vmul.f32 0.17677669, %v145_v42  ;;  %163 = vst.msk [vmem:[#allocation3 + $0x28] sm:$0xff] %vm38_vm1, %v155_v41  ;;  %v2160_v3 = vld [vmem:[%s2905_s6] ss:$0 sm:$0xff]  ;;  %s2304_s6 = smov 32  }
   0xd   :  { %v2450_v44 = vld [vmem:[#allocation3 + $0x78] sm:$0xff]  ;;  %v198_v46 = vadd.f32 %v197_v40, %v196_v34  ;;  %162 = vst.msk [vmem:[#allocation3 + $0x18] sm:$0xff] %vm38_vm1, %v154_v43 }
   0xe   :  { %v190_v45 = vrot.slane %v189_v38, 2  ;;  %2089 = vmatmul.msk.f32.gmra.mxu0 %vm38_vm1, %v31_v27  ;;  %290 = vmatpush.msrb.mxu1 %v2450_v44  ;;  %v207_v48 = vadd.f32 %v2403_v19, %v206_v39  ;;  %165 = vst.msk [vmem:[#allocation3 + $0x48] sm:$0xff] %vm38_vm1, %v157_v47 }
   0xf   :  { %273 = vmatpush.msrb.mxu0 %v2427_v28  ;;  %v199_v51 = vrot.slane %v198_v46, 2  ;;  %v2463_v52 = vld [vmem:[#allocation3 + $0x68] sm:$0xff]  ;;  %161 = vst.msk [vmem:[#allocation3 + $0x8] sm:$0xff] %vm38_vm1, %v153_v49 }
  0x10   :  { %v191_v50 = vadd.f32 %v190_v45, %v189_v38  ;;  %291 = vmatpush.msrb.mxu1 %v2463_v52  ;;  %v209_v55 = vsel %vm208_vm2, %v2403_v19, %v207_v48 }
  0x11   :  { %464 = vmatpush.msra.mxu0 %v2370_v8  ;;  %2091 = vmatmul.msk.f32.gmra.mxu1 %vm74_vm0, %v27_v18  ;;  %v200_v54 = vadd.f32 %v199_v51, %v198_v46  ;;  %v2472_v58 = vld [vmem:[#allocation3 + $0x38] sm:$0xff] }
  0x12   :  { %v192_v53 = vrot.slane %v191_v50, 1  ;;  %2093 = vmatmul.msk.f32.gmra.mxu2 %vm74_vm0, %v29_v23  ;;  %247 = vmatpush.msrb.mxu3 %v2472_v58  ;;  %v2477_v60 = vld [vmem:[#allocation3 + $0x58] sm:$0xff] }
  0x13   :  { %465 = vmatpush.msra.mxu0 %v2382_v11  ;;  %v201_v57 = vrot.slane %v200_v54, 1  ;;  %292 = vmatpush.msrb.mxu1 %v2477_v60  ;;  %v2481_v62 = vld [vmem:[#allocation3 + $0x28] sm:$0xff] }
  0x14   :  { %v193_v56 = vadd.f32 %v192_v53, %v191_v50  ;;  %v2485_v63 = vld [vmem:[#allocation3 + $0x18] sm:$0xff]  ;;  %248 = vmatpush.msrb.mxu3 %v2481_v62 }
  0x15   :  { %466 = vmatpush.msra.mxu0 %v2398_v17  ;;  %v202_v61 = vadd.f32 %v201_v57, %v200_v54  ;;  %v2490_v1 = vld [vmem:[#allocation3 + $0x48] sm:$0xff] }
  0x16   :  { %v2474_v59 = vmul.f32 %v209_v55, %v193_v56  ;;  %293 = vmatpush.msrb.mxu1 %v2490_v1  ;;  %v2493_v2 = vld [vmem:[#allocation3 + $0x8] sm:$0xff]  ;;  %249 = vmatpush.msrb.mxu3 %v2485_v63 }
  0x17   :  { %467 = vmatpush.msra.mxu0 %v2427_v28  ;;  %v2487_v0 = vmul.f32 %v209_v55, %v202_v61 }
  0x18   :  { %2094 = vmatmul.msk.f32.vlgmr.msra.gmra.mxu3 %vm74_vm0, %v2474_v59  ;;  %484 = vmatpush.msra.mxu1 %v2472_v58 }
  0x19   :  { %2096 = vmatmul.msk.f32.vlgmr.msrb.gmra.mxu0 %vm74_vm0, %v2487_v0  ;;  %2097 = vmatmul.msk.f32.vlgmr.msrb.gmra.mxu1 %vm74_vm0, %v2487_v0 }
  0x1a   :  { %250 = vmatpush.msrb.mxu3 %v2493_v2  ;;  %485 = vmatpush.msra.mxu1 %v2481_v62 }
  0x1c   :  { %486 = vmatpush.msra.mxu1 %v2485_v63 }
  0x1e   :  { %487 = vmatpush.msra.mxu1 %v2493_v2 }
  0x20   :  { %2095 = vmatmul.msk.f32.vlgmr.msrb.gmra.mxu3 %vm74_vm0, %v2474_v59 }
  0x83   :  { %v62_v4 = vpop.f32.mrf.mxu0 }
  0x84   :  { %v63_v5 = vadd.f32 %v2160_v3, %v62_v4 }
  0x86   :  { %v2510_v6 = vpop.f32.mrf.mxu1  ;;  %68 = vst [vmem:[#allocation2] sm:$0xff] %v63_v5 }
  0x8b   :  { %v65_v7 = vpop.f32.mrf.mxu0 }
  0x8c   :  { %v66_v9 = vadd.f32 %v2160_v3, %v65_v7  ;;  %v419_v7 = vsel %vm387_vm9, %v2487_v0, %v2474_v59 }
  0x8d   :  { %v2512_v10 = vpop.f32.mrf.mxu2  ;;  %v383_v50 = vld [vmem:[#allocation2] sm:$0x3] }
  0x8e   :  { %v2514_v12 = vpop.f32.mrf.mxu1  ;;  %69 = vst [vmem:[#allocation2 + $0x8] sm:$0xff] %v66_v9 }
  0x8f   :  { %319 = vmatpush.msrb.mxu2 %v2514_v12  ;;  %558 = vmatpush.msrb.mxu0 %v2514_v12 }
  0x91   :  { %320 = vmatpush.msrb.mxu2 %v2510_v6  ;;  %559 = vmatpush.msrb.mxu0 %v2510_v6 }
  0x93   :  { %509 = vmatpush.msra.mxu2 %v2370_v8 }
  0x95   :  { %510 = vmatpush.msra.mxu2 %v2382_v11  ;;  %v2522_v13 = vpop.f32.mrf.mxu2 }
  0x96   :  { %342 = vmatpush.msra.mxu3 %v2522_v13  ;;  %581 = vmatpush.msrb.mxu1 %v2522_v13  ;;  %v295_v14 = vpop.f32.mrf.mxu1  ;;  %v275_v37 = vpop.f32.mrf.mxu0 }
  0x97   :  { %511 = vmatpush.msra.mxu2 %v2398_v17  ;;  %v300_v15 = vmul.f32 1.442695, %v295_v14  ;;  %v386_v42 = vrot.slane %v275_v37, 7 }
  0x98   :  { %343 = vmatpush.msra.mxu3 %v2512_v10  ;;  %582 = vmatpush.msrb.mxu1 %v2512_v10 }
  0x99   :  { %512 = vmatpush.msra.mxu2 %v2427_v28  ;;  %2163 = vpow2.f32 %v300_v15 }
  0x9a   :  { %529 = vmatpush.msrb.mxu3 %v2450_v44 }
  0x9b   :  { %v232_v16 = vpop.f32.mrf.mxu3 }
  0x9c   :  { %530 = vmatpush.msrb.mxu3 %v2463_v52  ;;  %v388_v51 = vsel %vm387_vm9, %v386_v42, %v232_v16 }
  0x9d   :  { %v390_v61 = vadd.f32 %v388_v51, %v383_v50 }
  0x9e   :  { %531 = vmatpush.msrb.mxu3 %v2477_v60 }
  0x9f   :  { %v2164_v18 = vpop.eup %2163 }
  0xa0   :  { %532 = vmatpush.msrb.mxu3 %v2490_v1  ;;  %v352_v19 = vsel %vm348_vm3, %v2164_v18, 0.0 }
  0xa1   :  { %2099 = vmatmul.msk.f32.vlgmr.msra.gmra.mxu3 %vm38_vm1, %v2164_v18  ;;  %353 = vadd.xlane.f32.xlu0 %v352_v19 }
  0xa2   :  { %718 = vmatpush.msra.mxu3 %v2472_v58 }
  0xa3   :  { %v252_v20 = vpop.f32.mrf.mxu3 }
  0xa4   :  { %v298_v21 = vmul.f32 1.442695, %v252_v20  ;;  %719 = vmatpush.msra.mxu3 %v2481_v62 }
  0xa6   :  { %2165 = vpow2.f32 %v298_v21  ;;  %720 = vmatpush.msra.mxu3 %v2485_v63 }
  0xa8   :  { %721 = vmatpush.msra.mxu3 %v2493_v2 }
  0xac   :  { %v2166_v22 = vpop.eup %2165 }
  0xad   :  { %v349_v23 = vsel %vm348_vm3, %v2166_v22, 0.0  ;;  %2098 = vmatmul.msk.f32.vlgmr.msrb.gmra.mxu2 %vm38_vm1, %v2166_v22 }
  0xae   :  { %350 = vadd.xlane.f32.xlu0 %v349_v23  ;;  %698 = vmatpush.msrb.mxu2 %v2370_v8 }
  0xb0   :  { %699 = vmatpush.msrb.mxu2 %v2382_v11 }
  0xb2   :  { %700 = vmatpush.msrb.mxu2 %v2398_v17 }
  0xb4   :  { %701 = vmatpush.msrb.mxu2 %v2427_v28 }
 0x114   :  { %v354_v24 = vpop.xlane.xlu0 %353 }
 0x115   :  { %2167 = vrcp.f32 %v354_v24  ;;  %v380_v32 = vand.u32 2147483648, %v354_v24  ;;  %vm374_vm5 = vweird.f32 %v354_v24  ;;  %v378_v33 = vand.u32 2147483647, %v354_v24 }
 0x117   :  { %v381_v38 = vor.u32 1.1754944e-38, %v380_v32  ;;  %vm379_vm7 = vcmp.eq.f32.partialorder %v378_v33, 8.507059e+37 }
 0x11b   :  { %v2168_v25 = vpop.eup %2167 }
 0x11c   :  { %v370_v26 = vmul.f32 %v2168_v25, %v354_v24  ;;  %vm375_vm4 = vweird.f32 %v2168_v25 }
 0x11d   :  { %vm376_vm6 = vmor %vm374_vm5, %vm375_vm4 }
 0x11e   :  { %v371_v27 = vsub.f32 1.0, %v370_v26 }
 0x120   :  { %v372_v30 = vmul.f32 %v2168_v25, %v371_v27 }
 0x121   :  { %v351_v29 = vpop.xlane.xlu0 %350 }
 0x122   :  { %2169 = vrcp.f32 %v351_v29  ;;  %v373_v31 = vadd.f32 %v2168_v25, %v372_v30  ;;  %v366_v41 = vand.u32 2147483648, %v351_v29  ;;  %v364_v45 = vand.u32 2147483647, %v351_v29 }
 0x123   :  { %vm360_vm10 = vweird.f32 %v351_v29 }
 0x124   :  { %v377_v36 = vsel %vm376_vm6, %v2168_v25, %v373_v31  ;;  %v345_v46 = vpop.f32.mrf.mxu3  ;;  %v367_v49 = vor.u32 1.1754944e-38, %v366_v41  ;;  %vm365_vm12 = vcmp.eq.f32.partialorder %v364_v45, 8.507059e+37 }
 0x125   :  { %v382_v40 = vsel %vm379_vm7, %v381_v38, %v377_v36 }
 0x126   :  { %v392_v47 = vmul.f32 %v382_v40, %v345_v46 }
 0x128   :  { %v2170_v34 = vpop.eup %2169  ;;  %v395_v56 = vrot.slane %v392_v47, 7 }
 0x129   :  { %v356_v35 = vmul.f32 %v2170_v34, %v351_v29  ;;  %vm361_vm8 = vweird.f32 %v2170_v34 }
 0x12a   :  { %vm362_vm11 = vmor %vm360_vm10, %vm361_vm8 }
 0x12b   :  { %v357_v39 = vsub.f32 1.0, %v356_v35 }
 0x12d   :  { %v358_v43 = vmul.f32 %v2170_v34, %v357_v39 }
 0x12f   :  { %v359_v48 = vadd.f32 %v2170_v34, %v358_v43 }
 0x130   :  { %v322_v54 = vpop.f32.mrf.mxu2 }
 0x131   :  { %v363_v53 = vsel %vm362_vm11, %v2170_v34, %v359_v48 }
 0x132   :  { %v368_v55 = vsel %vm365_vm12, %v367_v49, %v363_v53 }
 0x133   :  { %v391_v57 = vmul.f32 %v368_v55, %v322_v54 }
 0x135   :  { %v396_v3 = vsel %vm387_vm9, %v395_v56, %v391_v57 }
 0x136   :  { %v398_v4 = vadd.f32 %v396_v3, %v390_v61 }
 0x138   :  { %2171 = vtanh.f32 %v398_v4  ;;  %v2100_v9 = vmul.f32 -1.442695, %v398_v4 }
 0x13a   :  { %2173 = vpow2.f32 %v2100_v9 }
 0x13e   :  { %v2172_v5 = vpop.eup %2171 }
 0x13f   :  { %425 = vrot.lane.b32.xlu1 %v2172_v5, %s2304_s6 }
 0x140   :  { %v2174_v14 = vpop.eup %2173 }
 0x141   :  { %v402_v15 = vadd.f32 1.0, %v2174_v14 }
 0x143   :  { %2175 = vrcp.f32 %v402_v15  ;;  %v414_v22 = vand.u32 2147483648, %v402_v15  ;;  %vm408_vm14 = vweird.f32 %v402_v15  ;;  %v412_v23 = vand.u32 2147483647, %v402_v15 }
 0x145   :  { %v415_v25 = vor.u32 1.1754944e-38, %v414_v22  ;;  %vm413_vm2 = vcmp.eq.f32.partialorder %v412_v23, 8.507059e+37 }
 0x147   :  { %420 = vrot.lane.b32.xlu1 %v419_v7, %s2304_s6 }
 0x149   :  { %v2176_v16 = vpop.eup %2175 }
 0x14a   :  { %v404_v18 = vmul.f32 %v2176_v16, %v402_v15  ;;  %vm409_vm13 = vweird.f32 %v2176_v16 }
 0x14b   :  { %vm410_vm15 = vmor %vm408_vm14, %vm409_vm13 }
 0x14c   :  { %v405_v19 = vsub.f32 1.0, %v404_v18 }
 0x14e   :  { %v406_v20 = vmul.f32 %v2176_v16, %v405_v19 }
 0x150   :  { %v407_v21 = vadd.f32 %v2176_v16, %v406_v20 }
 0x152   :  { %v411_v24 = vsel %vm410_vm15, %v2176_v16, %v407_v21 }
 0x153   :  { %v416_v0 = vsel %vm413_vm2, %v415_v25, %v411_v24 }
 0x1b1   :  { %v426_v59 = vpop.permute.xlu1 %425 }
 0x1b2   :  { %v428_v26 = vmul.f32 %v426_v59, %v416_v0 }
 0x1b4   :  { %430 = vrot.lane.b32.xlu2 %v428_v26, %s2304_s6 }
 0x1b9   :  { %v421_v27 = vpop.permute.xlu1 %420 }
 0x1ba   :  { %v423_v29 = vmul.f32 %v421_v27, %v416_v0 }
 0x20e   :  { %v431_v30 = vpop.permute.xlu2 %430 }
 0x20f   :  { %v2554_v31 = vadd.f32 %v431_v30, %v423_v29  ;;  %v622_v29 = vld [vmem:[#allocation2 + $0x2] sm:$0x3] }
 0x211   :  { %2177 = vtanh.f32 %v2554_v31 }
 0x217   :  { %v2178_v32 = vpop.eup %2177 }
 0x218   :  { %436 = vrot.lane.b32.xlu2 %v2178_v32, %s2304_s6 }
 0x272   :  { %v437_v33 = vpop.permute.xlu2 %436 }
 0x273   :  { %v2558_v34 = vmul.f32 %v437_v33, %v416_v0 }
 0x275   :  { %v447_v35 = vperm.slane %v2558_v34, 0  ;;  %v446_v36 = vrot.slane %v2558_v34, 1 }
 0x277   :  { %448 = vrot.lane.b32.xlu1 %v447_v35, %s2305_s21  ;;  %v492_v37 = vperm.slane %v446_v36, 0 }
 0x279   :  { %493 = vrot.lane.b32.xlu0 %v492_v37, %s2305_s21 }
 0x2e9   :  { %v449_v38 = vpop.permute.xlu1 %448 }
 0x2ea   :  { %2101 = vmatmul.msk.f32.vlgmr.msra.gmra.mxu0 %vm74_vm0, %v449_v38  ;;  %2102 = vmatmul.msk.f32.vlgmr.msra.gmra.mxu1 %vm74_vm0, %v449_v38 }
 0x2eb   :  { %v494_v39 = vpop.permute.xlu0 %493  ;;  %743 = vmatpush.msra.mxu0 %v2370_v8  ;;  %763 = vmatpush.msra.mxu1 %v2450_v44 }
 0x2ec   :  { %2103 = vmatmul.msk.f32.vlgmr.msra.gmra.mxu2 %vm74_vm0, %v494_v39  ;;  %2104 = vmatmul.msk.f32.vlgmr.msrb.gmra.mxu3 %vm74_vm0, %v494_v39 }
 0x2ed   :  { %792 = vmatpush.msra.mxu2 %v2514_v12  ;;  %815 = vmatpush.msrb.mxu3 %v2522_v13 }
 0x2ee   :  { %744 = vmatpush.msra.mxu0 %v2382_v11  ;;  %764 = vmatpush.msra.mxu1 %v2463_v52 }
 0x2ef   :  { %793 = vmatpush.msra.mxu2 %v2510_v6  ;;  %816 = vmatpush.msrb.mxu3 %v2512_v10 }
 0x2f0   :  { %745 = vmatpush.msra.mxu0 %v2398_v17  ;;  %765 = vmatpush.msra.mxu1 %v2477_v60 }
 0x2f2   :  { %746 = vmatpush.msra.mxu0 %v2427_v28  ;;  %766 = vmatpush.msra.mxu1 %v2490_v1 }
 0x367   :  { %v489_v40 = vpop.f32.mrf.mxu1  ;;  %v469_v4 = vpop.f32.mrf.mxu0 }
 0x368   :  { %v537_v41 = vmul.f32 1.442695, %v489_v40 }
 0x36a   :  { %2179 = vpow2.f32 %v537_v41 }
 0x36f   :  { %v534_v42 = vpop.f32.mrf.mxu3  ;;  %v514_v5 = vpop.f32.mrf.mxu2 }
 0x370   :  { %v2180_v43 = vpop.eup %2179  ;;  %v539_v45 = vmul.f32 1.442695, %v534_v42  ;;  %v625_v18 = vrot.slane %v514_v5, 7 }
 0x371   :  { %2105 = vmatmul.msk.f32.vlgmr.msrb.gmra.mxu0 %vm38_vm1, %v2180_v43  ;;  %v587_v46 = vsel %vm348_vm3, %v2180_v43, 0.0 }
 0x372   :  { %2181 = vpow2.f32 %v539_v45  ;;  %588 = vadd.xlane.f32.xlu1 %v587_v46  ;;  %932 = vmatpush.msrb.mxu0 %v2370_v8  ;;  %v626_v0 = vsel %vm387_vm9, %v625_v18, %v469_v4 }
 0x373   :  { %v628_v33 = vadd.f32 %v626_v0, %v622_v29 }
 0x374   :  { %933 = vmatpush.msrb.mxu0 %v2382_v11 }
 0x376   :  { %934 = vmatpush.msrb.mxu0 %v2398_v17 }
 0x378   :  { %v2182_v47 = vpop.eup %2181  ;;  %935 = vmatpush.msrb.mxu0 %v2427_v28 }
 0x379   :  { %2106 = vmatmul.msk.f32.vlgmr.msrb.gmra.mxu1 %vm38_vm1, %v2182_v47  ;;  %v590_v48 = vsel %vm348_vm3, %v2182_v47, 0.0 }
 0x37a   :  { %591 = vadd.xlane.f32.xlu2 %v590_v48  ;;  %952 = vmatpush.msrb.mxu1 %v2472_v58 }
 0x37c   :  { %953 = vmatpush.msrb.mxu1 %v2481_v62 }
 0x37e   :  { %954 = vmatpush.msrb.mxu1 %v2485_v63 }
 0x380   :  { %955 = vmatpush.msrb.mxu1 %v2493_v2 }
 0x3e5   :  { %v589_v49 = vpop.xlane.xlu1 %588 }
 0x3e6   :  { %2183 = vrcp.f32 %v589_v49  ;;  %vm598_vm5 = vweird.f32 %v589_v49  ;;  %v604_v7 = vand.u32 2147483648, %v589_v49  ;;  %v602_v14 = vand.u32 2147483647, %v589_v49 }
 0x3e8   :  { %v605_v21 = vor.u32 1.1754944e-38, %v604_v7  ;;  %vm603_vm11 = vcmp.eq.f32.partialorder %v602_v14, 8.507059e+37 }
 0x3ec   :  { %v2184_v50 = vpop.eup %2183 }
 0x3ed   :  { %v594_v51 = vmul.f32 %v2184_v50, %v589_v49  ;;  %v592_v53 = vpop.xlane.xlu2 %591  ;;  %vm599_vm4 = vweird.f32 %v2184_v50 }
 0x3ee   :  { %2185 = vrcp.f32 %v592_v53  ;;  %v618_v9 = vand.u32 2147483648, %v592_v53  ;;  %v616_v16 = vand.u32 2147483647, %v592_v53  ;;  %vm600_vm7 = vmor %vm598_vm5, %vm599_vm4  ;;  %vm612_vm8 = vweird.f32 %v592_v53  ;;  %v561_v27 = vpop.f32.mrf.mxu0 }
 0x3ef   :  { %v595_v54 = vsub.f32 1.0, %v594_v51 }
 0x3f0   :  { %v619_v22 = vor.u32 1.1754944e-38, %v618_v9  ;;  %vm617_vm12 = vcmp.eq.f32.partialorder %v616_v16, 8.507059e+37 }
 0x3f1   :  { %v596_v55 = vmul.f32 %v2184_v50, %v595_v54 }
 0x3f3   :  { %v597_v3 = vadd.f32 %v2184_v50, %v596_v55 }
 0x3f4   :  { %v2186_v56 = vpop.eup %2185 }
 0x3f5   :  { %v608_v57 = vmul.f32 %v2186_v56, %v592_v53  ;;  %vm613_vm6 = vweird.f32 %v2186_v56  ;;  %v601_v19 = vsel %vm600_vm7, %v2184_v50, %v597_v3 }
 0x3f6   :  { %vm614_vm10 = vmor %vm612_vm8, %vm613_vm6  ;;  %v606_v24 = vsel %vm603_vm11, %v605_v21, %v601_v19  ;;  %v584_v25 = vpop.f32.mrf.mxu1 }
 0x3f7   :  { %v609_v61 = vsub.f32 1.0, %v608_v57  ;;  %v629_v30 = vmul.f32 %v606_v24, %v561_v27 }
 0x3f9   :  { %v610_v15 = vmul.f32 %v2186_v56, %v609_v61 }
 0x3fb   :  { %v611_v20 = vadd.f32 %v2186_v56, %v610_v15 }
 0x3fd   :  { %v615_v23 = vsel %vm614_vm10, %v2186_v56, %v611_v20 }
 0x3fe   :  { %v620_v59 = vsel %vm617_vm12, %v619_v22, %v615_v23 }
 0x3ff   :  { %v630_v26 = vmul.f32 %v620_v59, %v584_v25 }
 0x401   :  { %v633_v32 = vrot.slane %v630_v26, 7 }
 0x403   :  { %v634_v35 = vsel %vm387_vm9, %v633_v32, %v629_v30 }
 0x404   :  { %v636_v36 = vadd.f32 %v634_v35, %v628_v33 }
 0x406   :  { %2187 = vtanh.f32 %v636_v36  ;;  %v2107_v38 = vmul.f32 -1.442695, %v636_v36 }
 0x408   :  { %2189 = vpow2.f32 %v2107_v38 }
 0x40c   :  { %v2188_v37 = vpop.eup %2187 }
 0x40d   :  { %659 = vrot.lane.b32.xlu0 %v2188_v37, %s2304_s6 }
 0x40e   :  { %v2190_v39 = vpop.eup %2189 }
 0x40f   :  { %v640_v40 = vadd.f32 1.0, %v2190_v39 }
 0x411   :  { %2191 = vrcp.f32 %v640_v40  ;;  %v652_v47 = vand.u32 2147483648, %v640_v40  ;;  %vm646_vm14 = vweird.f32 %v640_v40  ;;  %v650_v48 = vand.u32 2147483647, %v640_v40 }
 0x413   :  { %v653_v50 = vor.u32 1.1754944e-38, %v652_v47  ;;  %vm651_vm2 = vcmp.eq.f32.partialorder %v650_v48, 8.507059e+37 }
 0x417   :  { %v2192_v41 = vpop.eup %2191 }
 0x418   :  { %v642_v42 = vmul.f32 %v2192_v41, %v640_v40  ;;  %vm647_vm13 = vweird.f32 %v2192_v41 }
 0x419   :  { %vm648_vm15 = vmor %vm646_vm14, %vm647_vm13 }
 0x41a   :  { %v643_v43 = vsub.f32 1.0, %v642_v42 }
 0x41c   :  { %v644_v45 = vmul.f32 %v2192_v41, %v643_v43 }
 0x41e   :  { %v645_v46 = vadd.f32 %v2192_v41, %v644_v45 }
 0x420   :  { %v649_v49 = vsel %vm648_vm15, %v2192_v41, %v645_v46 }
 0x421   :  { %v654_v53 = vsel %vm651_vm2, %v653_v50, %v649_v49 }
 0x422   :  { %v657_v55 = vmul.f32 %v654_v53, %v2554_v31 }
 0x47f   :  { %v660_v51 = vpop.permute.xlu0 %659 }
 0x480   :  { %v662_v54 = vmul.f32 %v660_v51, %v654_v53 }
 0x482   :  { %664 = vrot.lane.b32.xlu0 %v662_v54, %s2304_s6 }
 0x4f4   :  { %v665_v56 = vpop.permute.xlu0 %664 }
 0x4f5   :  { %v2597_v57 = vadd.f32 %v665_v56, %v657_v55  ;;  %v856_v56 = vld [vmem:[#allocation2 + $0x4] sm:$0x3] }
 0x4f7   :  { %2193 = vtanh.f32 %v2597_v57 }
 0x4fd   :  { %v2194_v61 = vpop.eup %2193 }
 0x4fe   :  { %670 = vrot.lane.b32.xlu0 %v2194_v61, %s2304_s6 }
 0x570   :  { %v671_v3 = vpop.permute.xlu0 %670 }
 0x571   :  { %v2601_v4 = vmul.f32 %v671_v3, %v654_v53 }
 0x573   :  { %v681_v5 = vperm.slane %v2601_v4, 0  ;;  %v680_v7 = vrot.slane %v2601_v4, 1 }
 0x575   :  { %682 = vrot.lane.b32.xlu2 %v681_v5, %s2305_s21  ;;  %v726_v9 = vperm.slane %v680_v7, 0 }
 0x577   :  { %727 = vrot.lane.b32.xlu0 %v726_v9, %s2305_s21 }
 0x5cf   :  { %v683_v31 = vpop.permute.xlu2 %682 }
 0x5d0   :  { %2109 = vmatmul.msk.f32.vlgmr.msrb.gmra.mxu2 %vm74_vm0, %v683_v31  ;;  %2110 = vmatmul.msk.f32.vlgmr.msra.gmra.mxu3 %vm74_vm0, %v683_v31 }
 0x5d1   :  { %977 = vmatpush.msrb.mxu2 %v2370_v8  ;;  %997 = vmatpush.msra.mxu3 %v2450_v44 }
 0x5d3   :  { %978 = vmatpush.msrb.mxu2 %v2382_v11  ;;  %998 = vmatpush.msra.mxu3 %v2463_v52 }
 0x5d5   :  { %979 = vmatpush.msrb.mxu2 %v2398_v17  ;;  %999 = vmatpush.msra.mxu3 %v2477_v60 }
 0x5d7   :  { %980 = vmatpush.msrb.mxu2 %v2427_v28  ;;  %1000 = vmatpush.msra.mxu3 %v2490_v1 }
 0x5e9   :  { %v728_v14 = vpop.permute.xlu0 %727 }
 0x5ea   :  { %2111 = vmatmul.msk.f32.vlgmr.msra.gmra.mxu0 %vm74_vm0, %v728_v14  ;;  %2112 = vmatmul.msk.f32.vlgmr.msra.gmra.mxu1 %vm74_vm0, %v728_v14 }
 0x5eb   :  { %1026 = vmatpush.msra.mxu0 %v2514_v12  ;;  %1049 = vmatpush.msra.mxu1 %v2522_v13 }
 0x5ed   :  { %1027 = vmatpush.msra.mxu0 %v2510_v6  ;;  %1050 = vmatpush.msra.mxu1 %v2512_v10 }
 0x653   :  { %v723_v15 = vpop.f32.mrf.mxu3  ;;  %v703_v35 = vpop.f32.mrf.mxu2 }
 0x654   :  { %v771_v16 = vmul.f32 1.442695, %v723_v15 }
 0x656   :  { %2195 = vpow2.f32 %v771_v16 }
 0x65c   :  { %v2196_v18 = vpop.eup %2195 }
 0x65d   :  { %2113 = vmatmul.msk.f32.vlgmr.msra.gmra.mxu2 %vm38_vm1, %v2196_v18  ;;  %v821_v19 = vsel %vm348_vm3, %v2196_v18, 0.0 }
 0x65e   :  { %822 = vadd.xlane.f32.xlu0 %v821_v19  ;;  %1166 = vmatpush.msra.mxu2 %v2370_v8 }
 0x660   :  { %1167 = vmatpush.msra.mxu2 %v2382_v11 }
 0x662   :  { %1168 = vmatpush.msra.mxu2 %v2398_v17 }
 0x664   :  { %1169 = vmatpush.msra.mxu2 %v2427_v28 }
 0x667   :  { %v768_v20 = vpop.f32.mrf.mxu1  ;;  %v748_v36 = vpop.f32.mrf.mxu0 }
 0x668   :  { %v773_v21 = vmul.f32 1.442695, %v768_v20  ;;  %v859_v42 = vrot.slane %v748_v36, 7 }
 0x66a   :  { %2197 = vpow2.f32 %v773_v21  ;;  %v860_v53 = vsel %vm387_vm9, %v859_v42, %v703_v35 }
 0x66b   :  { %v862_v5 = vadd.f32 %v860_v53, %v856_v56 }
 0x670   :  { %v2198_v22 = vpop.eup %2197 }
 0x671   :  { %2114 = vmatmul.msk.f32.vlgmr.msrb.gmra.mxu3 %vm38_vm1, %v2198_v22  ;;  %v824_v23 = vsel %vm348_vm3, %v2198_v22, 0.0 }
 0x672   :  { %825 = vadd.xlane.f32.xlu1 %v824_v23  ;;  %1186 = vmatpush.msrb.mxu3 %v2472_v58 }
 0x674   :  { %1187 = vmatpush.msrb.mxu3 %v2481_v62 }
 0x676   :  { %1188 = vmatpush.msrb.mxu3 %v2485_v63 }
 0x678   :  { %1189 = vmatpush.msrb.mxu3 %v2493_v2 }
 0x6d1   :  { %v823_v24 = vpop.xlane.xlu0 %822 }
 0x6d2   :  { %2199 = vrcp.f32 %v823_v24  ;;  %vm832_vm5 = vweird.f32 %v823_v24  ;;  %v838_v37 = vand.u32 2147483648, %v823_v24  ;;  %v836_v39 = vand.u32 2147483647, %v823_v24 }
 0x6d4   :  { %v839_v46 = vor.u32 1.1754944e-38, %v838_v37  ;;  %vm837_vm11 = vcmp.eq.f32.partialorder %v836_v39, 8.507059e+37 }
 0x6d8   :  { %v2200_v25 = vpop.eup %2199 }
 0x6d9   :  { %v828_v59 = vmul.f32 %v2200_v25, %v823_v24  ;;  %vm833_vm4 = vweird.f32 %v2200_v25 }
 0x6da   :  { %vm834_vm7 = vmor %vm832_vm5, %vm833_vm4 }
 0x6db   :  { %v829_v26 = vsub.f32 1.0, %v828_v59 }
 0x6dd   :  { %v830_v27 = vmul.f32 %v2200_v25, %v829_v26 }
 0x6df   :  { %v831_v32 = vadd.f32 %v2200_v25, %v830_v27 }
 0x6e0   :  { %v795_v55 = vpop.f32.mrf.mxu2 }
 0x6e1   :  { %v835_v43 = vsel %vm834_vm7, %v2200_v25, %v831_v32 }
 0x6e2   :  { %v840_v49 = vsel %vm837_vm11, %v839_v46, %v835_v43 }
 0x6e3   :  { %v863_v61 = vmul.f32 %v840_v49, %v795_v55 }
 0x6e5   :  { %v826_v0 = vpop.xlane.xlu1 %825 }
 0x6e6   :  { %2201 = vrcp.f32 %v826_v0  ;;  %v852_v38 = vand.u32 2147483648, %v826_v0  ;;  %v850_v41 = vand.u32 2147483647, %v826_v0  ;;  %vm846_vm8 = vweird.f32 %v826_v0 }
 0x6e8   :  { %v853_v47 = vor.u32 1.1754944e-38, %v852_v38  ;;  %vm851_vm12 = vcmp.eq.f32.partialorder %v850_v41, 8.507059e+37 }
 0x6ec   :  { %v2202_v29 = vpop.eup %2201 }
 0x6ed   :  { %v842_v30 = vmul.f32 %v2202_v29, %v826_v0  ;;  %vm847_vm6 = vweird.f32 %v2202_v29 }
 0x6ee   :  { %vm848_vm10 = vmor %vm846_vm8, %vm847_vm6 }
 0x6ef   :  { %v843_v33 = vsub.f32 1.0, %v842_v30 }
 0x6f1   :  { %v844_v40 = vmul.f32 %v2202_v29, %v843_v33 }
 0x6f3   :  { %v845_v45 = vadd.f32 %v2202_v29, %v844_v40 }
 0x6f4   :  { %v818_v50 = vpop.f32.mrf.mxu3 }
 0x6f5   :  { %v849_v48 = vsel %vm848_vm10, %v2202_v29, %v845_v45 }
 0x6f6   :  { %v854_v51 = vsel %vm851_vm12, %v853_v47, %v849_v48 }
 0x6f7   :  { %v864_v54 = vmul.f32 %v854_v51, %v818_v50 }
 0x6f9   :  { %v867_v3 = vrot.slane %v864_v54, 7 }
 0x6fb   :  { %v868_v7 = vsel %vm387_vm9, %v867_v3, %v863_v61 }
 0x6fc   :  { %v870_v9 = vadd.f32 %v868_v7, %v862_v5 }
 0x6fe   :  { %2203 = vtanh.f32 %v870_v9  ;;  %v2115_v14 = vmul.f32 -1.442695, %v870_v9 }
 0x700   :  { %2205 = vpow2.f32 %v2115_v14 }
 0x704   :  { %v2204_v31 = vpop.eup %2203 }
 0x705   :  { %893 = vrot.lane.b32.xlu1 %v2204_v31, %s2304_s6 }
 0x706   :  { %v2206_v15 = vpop.eup %2205 }
 0x707   :  { %v874_v16 = vadd.f32 1.0, %v2206_v15 }
 0x709   :  { %2207 = vrcp.f32 %v874_v16  ;;  %v886_v23 = vand.u32 2147483648, %v874_v16  ;;  %vm880_vm14 = vweird.f32 %v874_v16  ;;  %v884_v24 = vand.u32 2147483647, %v874_v16 }
 0x70b   :  { %v887_v59 = vor.u32 1.1754944e-38, %v886_v23  ;;  %vm885_vm2 = vcmp.eq.f32.partialorder %v884_v24, 8.507059e+37 }
 0x70f   :  { %v2208_v18 = vpop.eup %2207 }
 0x710   :  { %v876_v19 = vmul.f32 %v2208_v18, %v874_v16  ;;  %vm881_vm13 = vweird.f32 %v2208_v18 }
 0x711   :  { %vm882_vm15 = vmor %vm880_vm14, %vm881_vm13 }
 0x712   :  { %v877_v20 = vsub.f32 1.0, %v876_v19 }
 0x714   :  { %v878_v21 = vmul.f32 %v2208_v18, %v877_v20 }
 0x716   :  { %v879_v22 = vadd.f32 %v2208_v18, %v878_v21 }
 0x718   :  { %v883_v25 = vsel %vm882_vm15, %v2208_v18, %v879_v22  ;;  %v1090_v22 = vld [vmem:[#allocation2 + $0x6] sm:$0x3] }
 0x719   :  { %v888_v26 = vsel %vm885_vm2, %v887_v59, %v883_v25 }
 0x71a   :  { %v891_v29 = vmul.f32 %v888_v26, %v2597_v57 }
 0x777   :  { %v894_v0 = vpop.permute.xlu1 %893 }
 0x778   :  { %v896_v27 = vmul.f32 %v894_v0, %v888_v26 }
 0x77a   :  { %898 = vrot.lane.b32.xlu2 %v896_v27, %s2304_s6 }
 0x7d4   :  { %v899_v30 = vpop.permute.xlu2 %898 }
 0x7d5   :  { %v2640_v32 = vadd.f32 %v899_v30, %v891_v29 }
 0x7d7   :  { %2209 = vtanh.f32 %v2640_v32 }
 0x7dd   :  { %v2210_v33 = vpop.eup %2209 }
 0x7de   :  { %904 = vrot.lane.b32.xlu2 %v2210_v33, %s2304_s6 }
 0x838   :  { %v905_v35 = vpop.permute.xlu2 %904 }
 0x839   :  { %v2644_v36 = vmul.f32 %v905_v35, %v888_v26 }
 0x83b   :  { %v915_v37 = vperm.slane %v2644_v36, 0  ;;  %v914_v38 = vrot.slane %v2644_v36, 1 }
 0x83d   :  { %916 = vrot.lane.b32.xlu1 %v915_v37, %s2305_s21  ;;  %v960_v39 = vperm.slane %v914_v38, 0 }
 0x83f   :  { %961 = vrot.lane.b32.xlu2 %v960_v39, %s2305_s21 }
 0x899   :  { %v962_v57 = vpop.permute.xlu2 %961 }
 0x89a   :  { %2119 = vmatmul.msk.f32.vlgmr.msrb.gmra.mxu2 %vm74_vm0, %v962_v57  ;;  %2120 = vmatmul.msk.f32.vlgmr.msra.gmra.mxu3 %vm74_vm0, %v962_v57 }
 0x89b   :  { %1260 = vmatpush.msrb.mxu2 %v2514_v12  ;;  %1283 = vmatpush.msra.mxu3 %v2522_v13 }
 0x89d   :  { %1261 = vmatpush.msrb.mxu2 %v2510_v6  ;;  %1284 = vmatpush.msra.mxu3 %v2512_v10 }
 0x8af   :  { %v917_v40 = vpop.permute.xlu1 %916 }
 0x8b0   :  { %2117 = vmatmul.msk.f32.vlgmr.msrb.gmra.mxu0 %vm74_vm0, %v917_v40  ;;  %2118 = vmatmul.msk.f32.vlgmr.msrb.gmra.mxu1 %vm74_vm0, %v917_v40 }
 0x8b1   :  { %1211 = vmatpush.msrb.mxu0 %v2370_v8  ;;  %1231 = vmatpush.msrb.mxu1 %v2450_v44 }
 0x8b3   :  { %1212 = vmatpush.msrb.mxu0 %v2382_v11  ;;  %1232 = vmatpush.msrb.mxu1 %v2463_v52 }
 0x8b5   :  { %1213 = vmatpush.msrb.mxu0 %v2398_v17  ;;  %1233 = vmatpush.msrb.mxu1 %v2477_v60 }
 0x8b7   :  { %1214 = vmatpush.msrb.mxu0 %v2427_v28  ;;  %1234 = vmatpush.msrb.mxu1 %v2490_v1  ;;  %v2674_v1 = vld [vmem:[#allocation3 + $0x30] sm:$0xff] }
 0x91d   :  { %v1002_v41 = vpop.f32.mrf.mxu3  ;;  %v982_v56 = vpop.f32.mrf.mxu2 }
 0x91e   :  { %v1007_v42 = vmul.f32 1.442695, %v1002_v41  ;;  %v1093_v31 = vrot.slane %v982_v56, 7 }
 0x920   :  { %2211 = vpow2.f32 %v1007_v42 }
 0x926   :  { %v2212_v43 = vpop.eup %2211 }
 0x927   :  { %2122 = vmatmul.msk.f32.vlgmr.msra.gmra.mxu1 %vm38_vm1, %v2212_v43  ;;  %v1058_v8 = vsel %vm348_vm3, %v2212_v43, 0.0 }
 0x928   :  { %1059 = vadd.xlane.f32.xlu2 %v1058_v8  ;;  %1420 = vmatpush.msra.mxu1 %v2472_v58  ;;  %v2677_v58 = vld [vmem:[#allocation3 + $0x20] sm:$0xff] }
 0x92a   :  { %1421 = vmatpush.msra.mxu1 %v2481_v62 }
 0x92c   :  { %1422 = vmatpush.msra.mxu1 %v2485_v63 }
 0x92d   :  { %v957_v11 = vpop.f32.mrf.mxu1 }
 0x92e   :  { %v1005_v44 = vmul.f32 1.442695, %v957_v11  ;;  %1423 = vmatpush.msra.mxu1 %v2493_v2 }
 0x930   :  { %2213 = vpow2.f32 %v1005_v44 }
 0x936   :  { %v2214_v52 = vpop.eup %2213 }
 0x937   :  { %2121 = vmatmul.msk.f32.vlgmr.msra.gmra.mxu0 %vm38_vm1, %v2214_v52  ;;  %v1055_v60 = vsel %vm348_vm3, %v2214_v52, 0.0 }
 0x938   :  { %1056 = vadd.xlane.f32.xlu1 %v1055_v60  ;;  %1400 = vmatpush.msra.mxu0 %v2674_v1 }
 0x93a   :  { %1401 = vmatpush.msra.mxu0 %v2677_v58 }
 0x93c   :  { %1402 = vmatpush.msra.mxu0 %v2398_v17  ;;  %v937_v17 = vpop.f32.mrf.mxu0 }
 0x93d   :  { %v1094_v18 = vsel %vm387_vm9, %v1093_v31, %v937_v17  ;;  %v2722_v17 = vld [vmem:[#allocation3 + $0x48] sm:$0xff] }
 0x93e   :  { %1403 = vmatpush.msra.mxu0 %v2427_v28  ;;  %v1096_v25 = vadd.f32 %v1094_v18, %v1090_v22 }
 0x99b   :  { %v1060_v62 = vpop.xlane.xlu2 %1059 }
 0x99c   :  { %2215 = vrcp.f32 %v1060_v62  ;;  %v1086_v49 = vand.u32 2147483648, %v1060_v62  ;;  %vm1080_vm5 = vweird.f32 %v1060_v62  ;;  %v1084_v50 = vand.u32 2147483647, %v1060_v62 }
 0x99e   :  { %v1087_v55 = vor.u32 1.1754944e-38, %v1086_v49  ;;  %vm1085_vm7 = vcmp.eq.f32.partialorder %v1084_v50, 8.507059e+37  ;;  %v2706_v49 = vld [vmem:[#allocation3 + $0x78] sm:$0xff]  ;;  %v2710_v50 = vld [vmem:[#allocation3 + $0x68] sm:$0xff] }
 0x9a2   :  { %v2216_v63 = vpop.eup %2215 }
 0x9a3   :  { %v1076_v2 = vmul.f32 %v2216_v63, %v1060_v62  ;;  %vm1081_vm4 = vweird.f32 %v2216_v63 }
 0x9a4   :  { %vm1082_vm6 = vmor %vm1080_vm5, %vm1081_vm4  ;;  %v1052_v9 = vpop.f32.mrf.mxu1 }
 0x9a5   :  { %v1077_v45 = vsub.f32 1.0, %v1076_v2 }
 0x9a7   :  { %v1078_v46 = vmul.f32 %v2216_v63, %v1077_v45 }
 0x9a9   :  { %v1079_v48 = vadd.f32 %v2216_v63, %v1078_v46 }
 0x9ab   :  { %v1057_v47 = vpop.xlane.xlu1 %1056  ;;  %v1083_v53 = vsel %vm1082_vm6, %v2216_v63, %v1079_v48 }
 0x9ac   :  { %2217 = vrcp.f32 %v1057_v47  ;;  %v1088_v61 = vsel %vm1085_vm7, %v1087_v55, %v1083_v53  ;;  %v1072_v3 = vand.u32 2147483648, %v1057_v47  ;;  %v1070_v7 = vand.u32 2147483647, %v1057_v47  ;;  %v2716_v53 = vld [vmem:[#allocation3 + $0x58] sm:$0xff] }
 0x9ad   :  { %v1098_v14 = vmul.f32 %v1088_v61, %v1052_v9  ;;  %vm1066_vm10 = vweird.f32 %v1057_v47  ;;  %v2736_v9 = vld [vmem:[#allocation3 + $0x8] sm:$0xff] }
 0x9ae   :  { %v1073_v16 = vor.u32 1.1754944e-38, %v1072_v3  ;;  %vm1071_vm12 = vcmp.eq.f32.partialorder %v1070_v7, 8.507059e+37  ;;  %v2727_v3 = vld [vmem:[#allocation3 + $0x38] sm:$0xff] }
 0x9af   :  { %v1101_v23 = vrot.slane %v1098_v14, 7  ;;  %v2733_v7 = vld [vmem:[#allocation3 + $0x18] sm:$0xff] }
 0x9b2   :  { %v2218_v51 = vpop.eup %2217 }
 0x9b3   :  { %v1062_v54 = vmul.f32 %v2218_v51, %v1057_v47  ;;  %vm1067_vm8 = vweird.f32 %v2218_v51 }
 0x9b4   :  { %vm1068_vm11 = vmor %vm1066_vm10, %vm1067_vm8  ;;  %v1029_v20 = vpop.f32.mrf.mxu0 }
 0x9b5   :  { %v1063_v28 = vsub.f32 1.0, %v1062_v54  ;;  %v2719_v54 = vld [vmem:[#allocation3] sm:$0xff] }
 0x9b7   :  { %v1064_v5 = vmul.f32 %v2218_v51, %v1063_v28 }
 0x9b9   :  { %v1065_v15 = vadd.f32 %v2218_v51, %v1064_v5  ;;  %v2730_v5 = vld [vmem:[#allocation3 + $0x28] sm:$0xff] }
 0x9bb   :  { %v1069_v19 = vsel %vm1068_vm11, %v2218_v51, %v1065_v15  ;;  %v2713_v51 = vld [vmem:[#allocation3 + $0x10] sm:$0xff] }
 0x9bc   :  { %v1074_v21 = vsel %vm1071_vm12, %v1073_v16, %v1069_v19 }
 0x9bd   :  { %v1097_v24 = vmul.f32 %v1074_v21, %v1029_v20 }
 0x9bf   :  { %v1102_v59 = vsel %vm387_vm9, %v1101_v23, %v1097_v24 }
 0x9c0   :  { %v1104_v0 = vadd.f32 %v1102_v59, %v1096_v25 }
 0x9c2   :  { %2219 = vtanh.f32 %v1104_v0  ;;  %v2123_v27 = vmul.f32 -1.442695, %v1104_v0 }
 0x9c4   :  { %2221 = vpow2.f32 %v2123_v27 }
 0x9c8   :  { %v2220_v26 = vpop.eup %2219 }
 0x9c9   :  { %1127 = vrot.lane.b32.xlu0 %v2220_v26, %s2304_s6 }
 0x9ca   :  { %v2222_v29 = vpop.eup %2221 }
 0x9cb   :  { %v1108_v30 = vadd.f32 1.0, %v2222_v29 }
 0x9cd   :  { %2223 = vrcp.f32 %v1108_v30  ;;  %v1120_v57 = vand.u32 2147483648, %v1108_v30  ;;  %vm1114_vm14 = vweird.f32 %v1108_v30  ;;  %v1118_v40 = vand.u32 2147483647, %v1108_v30 }
 0x9cf   :  { %v1121_v42 = vor.u32 1.1754944e-38, %v1120_v57  ;;  %vm1119_vm2 = vcmp.eq.f32.partialorder %v1118_v40, 8.507059e+37 }
 0x9d3   :  { %v2224_v33 = vpop.eup %2223 }
 0x9d4   :  { %v1110_v35 = vmul.f32 %v2224_v33, %v1108_v30  ;;  %vm1115_vm13 = vweird.f32 %v2224_v33 }
 0x9d5   :  { %vm1116_vm15 = vmor %vm1114_vm14, %vm1115_vm13 }
 0x9d6   :  { %v1111_v37 = vsub.f32 1.0, %v1110_v35 }
 0x9d8   :  { %v1112_v38 = vmul.f32 %v2224_v33, %v1111_v37 }
 0x9da   :  { %v1113_v39 = vadd.f32 %v2224_v33, %v1112_v38 }
 0x9dc   :  { %v1117_v41 = vsel %vm1116_vm15, %v2224_v33, %v1113_v39 }
 0x9dd   :  { %v1122_v8 = vsel %vm1119_vm2, %v1121_v42, %v1117_v41 }
 0x9de   :  { %v1125_v44 = vmul.f32 %v1122_v8, %v2640_v32 }
 0xa3b   :  { %v1128_v43 = vpop.permute.xlu0 %1127 }
 0xa3c   :  { %v1130_v11 = vmul.f32 %v1128_v43, %v1122_v8 }
 0xa3e   :  { %1132 = vrot.lane.b32.xlu0 %v1130_v11, %s2304_s6 }
 0xab0   :  { %v1133_v52 = vpop.permute.xlu0 %1132 }
 0xab1   :  { %v2687_v60 = vadd.f32 %v1133_v52, %v1125_v44 }
 0xab3   :  { %2225 = vtanh.f32 %v2687_v60 }
 0xab9   :  { %v2226_v62 = vpop.eup %2225 }
 0xaba   :  { %1138 = vrot.lane.b32.xlu0 %v2226_v62, %s2304_s6 }
 0xb2c   :  { %v1139_v63 = vpop.permute.xlu0 %1138 }
 0xb2d   :  { %v2691_v2 = vmul.f32 %v1139_v63, %v1122_v8  ;;  %v1324_v63 = vld [vmem:[#allocation2 + $0x8] sm:$0x3] }
 0xb2f   :  { %v1149_v45 = vperm.slane %v2691_v2, 0  ;;  %v1148_v46 = vrot.slane %v2691_v2, 1 }
 0xb31   :  { %1150 = vrot.lane.b32.xlu0 %v1149_v45, %s2305_s21  ;;  %v1194_v47 = vperm.slane %v1148_v46, 0 }
 0xb33   :  { %1195 = vrot.lane.b32.xlu2 %v1194_v47, %s2305_s21 }
 0xb8d   :  { %v1196_v32 = vpop.permute.xlu2 %1195 }
 0xb8e   :  { %2127 = vmatmul.msk.f32.vlgmr.msrb.gmra.mxu0 %vm74_vm0, %v1196_v32  ;;  %2128 = vmatmul.msk.f32.vlgmr.msrb.gmra.mxu1 %vm74_vm0, %v1196_v32 }
 0xb8f   :  { %1494 = vmatpush.msrb.mxu0 %v2514_v12  ;;  %1517 = vmatpush.msrb.mxu1 %v2522_v13 }
 0xb91   :  { %1495 = vmatpush.msrb.mxu0 %v2510_v6  ;;  %1518 = vmatpush.msrb.mxu1 %v2512_v10 }
 0xba3   :  { %v1151_v48 = vpop.permute.xlu0 %1150 }
 0xba4   :  { %2125 = vmatmul.msk.f32.vlgmr.msra.gmra.mxu2 %vm74_vm0, %v1151_v48  ;;  %2126 = vmatmul.msk.f32.vlgmr.msrb.gmra.mxu3 %vm74_vm0, %v1151_v48 }
 0xba5   :  { %1445 = vmatpush.msra.mxu2 %v2674_v1  ;;  %1465 = vmatpush.msrb.mxu3 %v2706_v49 }
 0xba7   :  { %1446 = vmatpush.msra.mxu2 %v2677_v58  ;;  %1466 = vmatpush.msrb.mxu3 %v2710_v50 }
 0xba9   :  { %1447 = vmatpush.msra.mxu2 %v2713_v51  ;;  %1467 = vmatpush.msrb.mxu3 %v2716_v53 }
 0xbab   :  { %1448 = vmatpush.msra.mxu2 %v2719_v54  ;;  %1468 = vmatpush.msrb.mxu3 %v2722_v17 }
 0xc0b   :  { %v1236_v55 = vpop.f32.mrf.mxu1  ;;  %v1216_v35 = vpop.f32.mrf.mxu0 }
 0xc0c   :  { %v1241_v28 = vmul.f32 1.442695, %v1236_v55  ;;  %v1327_v41 = vrot.slane %v1216_v35, 7 }
 0xc0e   :  { %2227 = vpow2.f32 %v1241_v28 }
 0xc14   :  { %v2228_v56 = vpop.eup %2227 }
 0xc15   :  { %2130 = vmatmul.msk.f32.vlgmr.msra.gmra.mxu3 %vm38_vm1, %v2228_v56  ;;  %v1292_v61 = vsel %vm348_vm3, %v2228_v56, 0.0 }
 0xc16   :  { %1293 = vadd.xlane.f32.xlu1 %v1292_v61  ;;  %1654 = vmatpush.msra.mxu3 %v2727_v3 }
 0xc18   :  { %1655 = vmatpush.msra.mxu3 %v2730_v5 }
 0xc1a   :  { %1656 = vmatpush.msra.mxu3 %v2733_v7 }
 0xc1c   :  { %1657 = vmatpush.msra.mxu3 %v2736_v9 }
 0xc27   :  { %v1191_v31 = vpop.f32.mrf.mxu3  ;;  %v1171_v29 = vpop.f32.mrf.mxu2 }
 0xc28   :  { %v1239_v14 = vmul.f32 1.442695, %v1191_v31  ;;  %v1328_v11 = vsel %vm387_vm9, %v1327_v41, %v1171_v29 }
 0xc29   :  { %v1330_v47 = vadd.f32 %v1328_v11, %v1324_v63 }
 0xc2a   :  { %2229 = vpow2.f32 %v1239_v14 }
 0xc30   :  { %v2230_v15 = vpop.eup %2229 }
 0xc31   :  { %2129 = vmatmul.msk.f32.vlgmr.msrb.gmra.mxu2 %vm38_vm1, %v2230_v15  ;;  %v1289_v16 = vsel %vm348_vm3, %v2230_v15, 0.0 }
 0xc32   :  { %1290 = vadd.xlane.f32.xlu0 %v1289_v16  ;;  %1634 = vmatpush.msrb.mxu2 %v2674_v1 }
 0xc34   :  { %1635 = vmatpush.msrb.mxu2 %v2677_v58 }
 0xc36   :  { %1636 = vmatpush.msrb.mxu2 %v2713_v51 }
 0xc38   :  { %1637 = vmatpush.msrb.mxu2 %v2719_v54 }
 0xc89   :  { %v1294_v18 = vpop.xlane.xlu1 %1293 }
 0xc8a   :  { %2231 = vrcp.f32 %v1294_v18  ;;  %v1320_v25 = vand.u32 2147483648, %v1294_v18  ;;  %vm1314_vm5 = vweird.f32 %v1294_v18  ;;  %v1318_v59 = vand.u32 2147483647, %v1294_v18 }
 0xc8c   :  { %v1321_v30 = vor.u32 1.1754944e-38, %v1320_v25  ;;  %vm1319_vm7 = vcmp.eq.f32.partialorder %v1318_v59, 8.507059e+37 }
 0xc90   :  { %v2232_v19 = vpop.eup %2231 }
 0xc91   :  { %v1310_v20 = vmul.f32 %v2232_v19, %v1294_v18  ;;  %vm1315_vm4 = vweird.f32 %v2232_v19 }
 0xc92   :  { %vm1316_vm6 = vmor %vm1314_vm5, %vm1315_vm4 }
 0xc93   :  { %v1311_v21 = vsub.f32 1.0, %v1310_v20 }
 0xc95   :  { %v1312_v22 = vmul.f32 %v2232_v19, %v1311_v21 }
 0xc97   :  { %v1313_v24 = vadd.f32 %v2232_v19, %v1312_v22 }
 0xc98   :  { %v1286_v40 = vpop.f32.mrf.mxu3 }
 0xc99   :  { %v1317_v26 = vsel %vm1316_vm6, %v2232_v19, %v1313_v24 }
 0xc9a   :  { %v1322_v37 = vsel %vm1319_vm7, %v1321_v30, %v1317_v26 }
 0xc9b   :  { %v1332_v42 = vmul.f32 %v1322_v37, %v1286_v40 }
 0xc9d   :  { %v1335_v45 = vrot.slane %v1332_v42, 7 }
 0xca5   :  { %v1291_v23 = vpop.xlane.xlu0 %1290 }
 0xca6   :  { %2233 = vrcp.f32 %v1291_v23  ;;  %v1306_v38 = vand.u32 2147483648, %v1291_v23  ;;  %v1304_v57 = vand.u32 2147483647, %v1291_v23  ;;  %vm1300_vm10 = vweird.f32 %v1291_v23 }
 0xca8   :  { %v1307_v8 = vor.u32 1.1754944e-38, %v1306_v38  ;;  %vm1305_vm12 = vcmp.eq.f32.partialorder %v1304_v57, 8.507059e+37 }
 0xcac   :  { %v2234_v0 = vpop.eup %2233 }
 0xcad   :  { %v1296_v27 = vmul.f32 %v2234_v0, %v1291_v23  ;;  %vm1301_vm8 = vweird.f32 %v2234_v0 }
 0xcae   :  { %vm1302_vm11 = vmor %vm1300_vm10, %vm1301_vm8 }
 0xcaf   :  { %v1297_v33 = vsub.f32 1.0, %v1296_v27 }
 0xcb1   :  { %v1298_v39 = vmul.f32 %v2234_v0, %v1297_v33 }
 0xcb3   :  { %v1299_v43 = vadd.f32 %v2234_v0, %v1298_v39 }
 0xcb4   :  { %v1263_v52 = vpop.f32.mrf.mxu2 }
 0xcb5   :  { %v1303_v44 = vsel %vm1302_vm11, %v2234_v0, %v1299_v43 }
 0xcb6   :  { %v1308_v62 = vsel %vm1305_vm12, %v1307_v8, %v1303_v44 }
 0xcb7   :  { %v1331_v46 = vmul.f32 %v1308_v62, %v1263_v52 }
 0xcb9   :  { %v1336_v32 = vsel %vm387_vm9, %v1335_v45, %v1331_v46 }
 0xcba   :  { %v1338_v48 = vadd.f32 %v1336_v32, %v1330_v47 }
 0xcbc   :  { %2235 = vtanh.f32 %v1338_v48  ;;  %v2131_v28 = vmul.f32 -1.442695, %v1338_v48 }
 0xcbe   :  { %2237 = vpow2.f32 %v2131_v28 }
 0xcc2   :  { %v2236_v55 = vpop.eup %2235 }
 0xcc3   :  { %1361 = vrot.lane.b32.xlu1 %v2236_v55, %s2304_s6 }
 0xcc4   :  { %v2238_v56 = vpop.eup %2237 }
 0xcc5   :  { %v1342_v61 = vadd.f32 1.0, %v2238_v56 }
 0xcc7   :  { %2239 = vrcp.f32 %v1342_v61  ;;  %v1354_v19 = vand.u32 2147483648, %v1342_v61  ;;  %vm1348_vm14 = vweird.f32 %v1342_v61  ;;  %v1352_v20 = vand.u32 2147483647, %v1342_v61 }
 0xcc9   :  { %v1355_v22 = vor.u32 1.1754944e-38, %v1354_v19  ;;  %vm1353_vm2 = vcmp.eq.f32.partialorder %v1352_v20, 8.507059e+37 }
 0xccd   :  { %v2240_v31 = vpop.eup %2239 }
 0xcce   :  { %v1344_v14 = vmul.f32 %v2240_v31, %v1342_v61  ;;  %vm1349_vm13 = vweird.f32 %v2240_v31 }
 0xccf   :  { %vm1350_vm15 = vmor %vm1348_vm14, %vm1349_vm13 }
 0xcd0   :  { %v1345_v15 = vsub.f32 1.0, %v1344_v14 }
 0xcd2   :  { %v1346_v16 = vmul.f32 %v2240_v31, %v1345_v15 }
 0xcd4   :  { %v1347_v18 = vadd.f32 %v2240_v31, %v1346_v16 }
 0xcd6   :  { %v1351_v21 = vsel %vm1350_vm15, %v2240_v31, %v1347_v18 }
 0xcd7   :  { %v1356_v24 = vsel %vm1353_vm2, %v1355_v22, %v1351_v21 }
 0xcd8   :  { %v1359_v59 = vmul.f32 %v1356_v24, %v2687_v60 }
 0xd35   :  { %v1362_v23 = vpop.permute.xlu1 %1361 }
 0xd36   :  { %v1364_v25 = vmul.f32 %v1362_v23, %v1356_v24 }
 0xd38   :  { %1366 = vrot.lane.b32.xlu2 %v1364_v25, %s2304_s6 }
 0xd92   :  { %v1367_v0 = vpop.permute.xlu2 %1366 }
 0xd93   :  { %v2750_v26 = vadd.f32 %v1367_v0, %v1359_v59  ;;  %v1558_v59 = vld [vmem:[#allocation2 + $0xa] sm:$0x3] }
 0xd95   :  { %2241 = vtanh.f32 %v2750_v26 }
 0xd9b   :  { %v2242_v27 = vpop.eup %2241 }
 0xd9c   :  { %1372 = vrot.lane.b32.xlu2 %v2242_v27, %s2304_s6 }
 0xdf6   :  { %v1373_v29 = vpop.permute.xlu2 %1372 }
 0xdf7   :  { %v2754_v30 = vmul.f32 %v1373_v29, %v1356_v24 }
 0xdf9   :  { %v1383_v33 = vperm.slane %v2754_v30, 0  ;;  %v1382_v35 = vrot.slane %v2754_v30, 1 }
 0xdfb   :  { %1384 = vrot.lane.b32.xlu2 %v1383_v33, %s2305_s21  ;;  %v1428_v37 = vperm.slane %v1382_v35, 0 }
 0xdfd   :  { %1429 = vrot.lane.b32.xlu1 %v1428_v37, %s2305_s21 }
 0xe55   :  { %v1385_v60 = vpop.permute.xlu2 %1384 }
 0xe56   :  { %2133 = vmatmul.msk.f32.vlgmr.msra.gmra.mxu0 %vm74_vm0, %v1385_v60  ;;  %2134 = vmatmul.msk.f32.vlgmr.msra.gmra.mxu1 %vm74_vm0, %v1385_v60 }
 0xe57   :  { %1679 = vmatpush.msra.mxu0 %v2674_v1  ;;  %1699 = vmatpush.msra.mxu1 %v2706_v49 }
 0xe59   :  { %1680 = vmatpush.msra.mxu0 %v2677_v58  ;;  %1700 = vmatpush.msra.mxu1 %v2710_v50 }
 0xe5b   :  { %1681 = vmatpush.msra.mxu0 %v2713_v51  ;;  %1701 = vmatpush.msra.mxu1 %v2716_v53 }
 0xe5d   :  { %1682 = vmatpush.msra.mxu0 %v2719_v54  ;;  %1702 = vmatpush.msra.mxu1 %v2722_v17 }
 0xe6f   :  { %v1430_v38 = vpop.permute.xlu1 %1429 }
 0xe70   :  { %2135 = vmatmul.msk.f32.vlgmr.msra.gmra.mxu2 %vm74_vm0, %v1430_v38  ;;  %2136 = vmatmul.msk.f32.vlgmr.msrb.gmra.mxu3 %vm74_vm0, %v1430_v38 }
 0xe71   :  { %1728 = vmatpush.msra.mxu2 %v2514_v12  ;;  %1751 = vmatpush.msrb.mxu3 %v2522_v13 }
 0xe73   :  { %1729 = vmatpush.msra.mxu2 %v2510_v6  ;;  %1752 = vmatpush.msrb.mxu3 %v2512_v10 }
 0xed3   :  { %v1425_v39 = vpop.f32.mrf.mxu1 }
 0xed4   :  { %v1473_v57 = vmul.f32 1.442695, %v1425_v39 }
 0xed6   :  { %2243 = vpow2.f32 %v1473_v57 }
 0xedc   :  { %v2244_v40 = vpop.eup %2243 }
 0xedd   :  { %2137 = vmatmul.msk.f32.vlgmr.msrb.gmra.mxu0 %vm38_vm1, %v2244_v40  ;;  %v1523_v41 = vsel %vm348_vm3, %v2244_v40, 0.0 }
 0xede   :  { %1524 = vadd.xlane.f32.xlu2 %v1523_v41  ;;  %1868 = vmatpush.msrb.mxu0 %v2674_v1 }
 0xee0   :  { %1869 = vmatpush.msrb.mxu0 %v2677_v58 }
 0xee2   :  { %1870 = vmatpush.msrb.mxu0 %v2713_v51 }
 0xee4   :  { %1871 = vmatpush.msrb.mxu0 %v2719_v54 }
 0xef3   :  { %v1470_v42 = vpop.f32.mrf.mxu3  ;;  %v1450_v28 = vpop.f32.mrf.mxu2 }
 0xef4   :  { %v1475_v43 = vmul.f32 1.442695, %v1470_v42  ;;  %v1561_v31 = vrot.slane %v1450_v28, 7 }
 0xef6   :  { %2245 = vpow2.f32 %v1475_v43 }
 0xefc   :  { %v2246_v8 = vpop.eup %2245 }
 0xefd   :  { %2138 = vmatmul.msk.f32.vlgmr.msrb.gmra.mxu1 %vm38_vm1, %v2246_v8  ;;  %v1526_v11 = vsel %vm348_vm3, %v2246_v8, 0.0 }
 0xefe   :  { %1527 = vadd.xlane.f32.xlu1 %v1526_v11  ;;  %1888 = vmatpush.msrb.mxu1 %v2727_v3  ;;  %v1405_v3 = vpop.f32.mrf.mxu0 }
 0xeff   :  { %v1562_v23 = vsel %vm387_vm9, %v1561_v31, %v1405_v3 }
 0xf00   :  { %1889 = vmatpush.msrb.mxu1 %v2730_v5  ;;  %v1564_v29 = vadd.f32 %v1562_v23, %v1558_v59 }
 0xf02   :  { %1890 = vmatpush.msrb.mxu1 %v2733_v7 }
 0xf04   :  { %1891 = vmatpush.msrb.mxu1 %v2736_v9 }
 0xf51   :  { %v1525_v44 = vpop.xlane.xlu2 %1524 }
 0xf52   :  { %2247 = vrcp.f32 %v1525_v44  ;;  %vm1534_vm5 = vweird.f32 %v1525_v44  ;;  %v1540_v5 = vand.u32 2147483648, %v1525_v44  ;;  %v1538_v56 = vand.u32 2147483647, %v1525_v44 }
 0xf54   :  { %v1541_v16 = vor.u32 1.1754944e-38, %v1540_v5  ;;  %vm1539_vm11 = vcmp.eq.f32.partialorder %v1538_v56, 8.507059e+37 }
 0xf58   :  { %v2248_v52 = vpop.eup %2247 }
 0xf59   :  { %v1530_v62 = vmul.f32 %v2248_v52, %v1525_v44  ;;  %vm1535_vm4 = vweird.f32 %v2248_v52 }
 0xf5a   :  { %vm1536_vm7 = vmor %vm1534_vm5, %vm1535_vm4  ;;  %v1497_v25 = vpop.f32.mrf.mxu0 }
 0xf5b   :  { %v1531_v45 = vsub.f32 1.0, %v1530_v62 }
 0xf5d   :  { %v1532_v46 = vmul.f32 %v2248_v52, %v1531_v45 }
 0xf5f   :  { %v1533_v48 = vadd.f32 %v2248_v52, %v1532_v46 }
 0xf61   :  { %v1537_v14 = vsel %vm1536_vm7, %v2248_v52, %v1533_v48 }
 0xf62   :  { %v1542_v20 = vsel %vm1539_vm11, %v1541_v16, %v1537_v14 }
 0xf63   :  { %v1565_v0 = vmul.f32 %v1542_v20, %v1497_v25 }
 0xf71   :  { %v1528_v63 = vpop.xlane.xlu1 %1527 }
 0xf72   :  { %2249 = vrcp.f32 %v1528_v63  ;;  %v1554_v7 = vand.u32 2147483648, %v1528_v63  ;;  %v1552_v61 = vand.u32 2147483647, %v1528_v63  ;;  %vm1548_vm8 = vweird.f32 %v1528_v63 }
 0xf74   :  { %v1555_v18 = vor.u32 1.1754944e-38, %v1554_v7  ;;  %vm1553_vm12 = vcmp.eq.f32.partialorder %v1552_v61, 8.507059e+37 }
 0xf78   :  { %v2250_v47 = vpop.eup %2249 }
 0xf79   :  { %v1544_v32 = vmul.f32 %v2250_v47, %v1528_v63  ;;  %vm1549_vm6 = vweird.f32 %v2250_v47 }
 0xf7a   :  { %vm1550_vm10 = vmor %vm1548_vm8, %vm1549_vm6  ;;  %v1520_v21 = vpop.f32.mrf.mxu1 }
 0xf7b   :  { %v1545_v55 = vsub.f32 1.0, %v1544_v32 }
 0xf7d   :  { %v1546_v9 = vmul.f32 %v2250_v47, %v1545_v55 }
 0xf7f   :  { %v1547_v15 = vadd.f32 %v2250_v47, %v1546_v9 }
 0xf81   :  { %v1551_v19 = vsel %vm1550_vm10, %v2250_v47, %v1547_v15 }
 0xf82   :  { %v1556_v22 = vsel %vm1553_vm12, %v1555_v18, %v1551_v19 }
 0xf83   :  { %v1566_v24 = vmul.f32 %v1556_v22, %v1520_v21 }
 0xf85   :  { %v1569_v27 = vrot.slane %v1566_v24, 7 }
 0xf87   :  { %v1570_v33 = vsel %vm387_vm9, %v1569_v27, %v1565_v0 }
 0xf88   :  { %v1572_v35 = vadd.f32 %v1570_v33, %v1564_v29 }
 0xf8a   :  { %2251 = vtanh.f32 %v1572_v35  ;;  %v2139_v60 = vmul.f32 -1.442695, %v1572_v35 }
 0xf8c   :  { %2253 = vpow2.f32 %v2139_v60 }
 0xf90   :  { %v2252_v37 = vpop.eup %2251 }
 0xf91   :  { %1595 = vrot.lane.b32.xlu0 %v2252_v37, %s2304_s6 }
 0xf92   :  { %v2254_v38 = vpop.eup %2253 }
 0xf93   :  { %v1576_v39 = vadd.f32 1.0, %v2254_v38 }
 0xf95   :  { %2255 = vrcp.f32 %v1576_v39  ;;  %v1588_v8 = vand.u32 2147483648, %v1576_v39  ;;  %vm1582_vm14 = vweird.f32 %v1576_v39  ;;  %v1586_v11 = vand.u32 2147483647, %v1576_v39 }
 0xf97   :  { %v1589_v52 = vor.u32 1.1754944e-38, %v1588_v8  ;;  %vm1587_vm2 = vcmp.eq.f32.partialorder %v1586_v11, 8.507059e+37 }
 0xf9b   :  { %v2256_v57 = vpop.eup %2255 }
 0xf9c   :  { %v1578_v40 = vmul.f32 %v2256_v57, %v1576_v39  ;;  %vm1583_vm13 = vweird.f32 %v2256_v57 }
 0xf9d   :  { %vm1584_vm15 = vmor %vm1582_vm14, %vm1583_vm13 }
 0xf9e   :  { %v1579_v41 = vsub.f32 1.0, %v1578_v40  ;;  %v1792_v40 = vld [vmem:[#allocation2 + $0xc] sm:$0x3] }
 0xfa0   :  { %v1580_v42 = vmul.f32 %v2256_v57, %v1579_v41 }
 0xfa2   :  { %v1581_v43 = vadd.f32 %v2256_v57, %v1580_v42 }
 0xfa4   :  { %v1585_v44 = vsel %vm1584_vm15, %v2256_v57, %v1581_v43 }
 0xfa5   :  { %v1590_v63 = vsel %vm1587_vm2, %v1589_v52, %v1585_v44 }
 0xfa6   :  { %v1593_v46 = vmul.f32 %v1590_v63, %v2750_v26 }
0x1003   :  { %v1596_v62 = vpop.permute.xlu0 %1595 }
0x1004   :  { %v1598_v45 = vmul.f32 %v1596_v62, %v1590_v63 }
0x1006   :  { %1600 = vrot.lane.b32.xlu0 %v1598_v45, %s2304_s6 }
0x1078   :  { %v1601_v47 = vpop.permute.xlu0 %1600 }
0x1079   :  { %v2793_v32 = vadd.f32 %v1601_v47, %v1593_v46 }
0x107b   :  { %2257 = vtanh.f32 %v2793_v32 }
0x1081   :  { %v2258_v48 = vpop.eup %2257 }
0x1082   :  { %1606 = vrot.lane.b32.xlu0 %v2258_v48, %s2304_s6 }
0x10f4   :  { %v1607_v55 = vpop.permute.xlu0 %1606 }
0x10f5   :  { %v2797_v3 = vmul.f32 %v1607_v55, %v1590_v63 }
0x10f7   :  { %v1617_v28 = vperm.slane %v2797_v3, 0  ;;  %v1616_v5 = vrot.slane %v2797_v3, 1 }
0x10f9   :  { %1618 = vrot.lane.b32.xlu0 %v1617_v28, %s2305_s21  ;;  %v1662_v7 = vperm.slane %v1616_v5, 0 }
0x10fb   :  { %1663 = vrot.lane.b32.xlu1 %v1662_v7, %s2305_s21 }
0x116b   :  { %v1619_v26 = vpop.permute.xlu0 %1618 }
0x116c   :  { %2141 = vmatmul.msk.f32.vlgmr.msrb.gmra.mxu2 %vm74_vm0, %v1619_v26  ;;  %2142 = vmatmul.msk.f32.vlgmr.msra.gmra.mxu3 %vm74_vm0, %v1619_v26 }
0x116d   :  { %v1664_v56 = vpop.permute.xlu1 %1663  ;;  %1913 = vmatpush.msrb.mxu2 %v2674_v1  ;;  %1933 = vmatpush.msra.mxu3 %v2706_v49 }
0x116e   :  { %2143 = vmatmul.msk.f32.vlgmr.msra.gmra.mxu0 %vm74_vm0, %v1664_v56  ;;  %2144 = vmatmul.msk.f32.vlgmr.msra.gmra.mxu1 %vm74_vm0, %v1664_v56 }
0x116f   :  { %1962 = vmatpush.msra.mxu0 %v2514_v12  ;;  %1985 = vmatpush.msra.mxu1 %v2522_v13 }
0x1170   :  { %1914 = vmatpush.msrb.mxu2 %v2677_v58  ;;  %1934 = vmatpush.msra.mxu3 %v2710_v50 }
0x1171   :  { %1963 = vmatpush.msra.mxu0 %v2510_v6  ;;  %1986 = vmatpush.msra.mxu1 %v2512_v10 }
0x1172   :  { %1915 = vmatpush.msrb.mxu2 %v2713_v51  ;;  %1935 = vmatpush.msra.mxu3 %v2716_v53 }
0x1174   :  { %1916 = vmatpush.msrb.mxu2 %v2719_v54  ;;  %1936 = vmatpush.msra.mxu3 %v2722_v17 }
0x11eb   :  { %v1704_v1 = vpop.f32.mrf.mxu1  ;;  %v1684_v21 = vpop.f32.mrf.mxu0 }
0x11ec   :  { %v1709_v12 = vmul.f32 1.442695, %v1704_v1  ;;  %v1795_v29 = vrot.slane %v1684_v21, 7 }
0x11ee   :  { %2259 = vpow2.f32 %v1709_v12 }
0x11ef   :  { %v1659_v13 = vpop.f32.mrf.mxu3  ;;  %v1639_v18 = vpop.f32.mrf.mxu2 }
0x11f0   :  { %v1707_v49 = vmul.f32 1.442695, %v1659_v13  ;;  %v1796_v60 = vsel %vm387_vm9, %v1795_v29, %v1639_v18 }
0x11f1   :  { %v1798_v43 = vadd.f32 %v1796_v60, %v1792_v40 }
0x11f2   :  { %2261 = vpow2.f32 %v1707_v49 }
0x11f4   :  { %v2260_v58 = vpop.eup %2259 }
0x11f5   :  { %2146 = vmatmul.msk.f32.vlgmr.msrb.gmra.mxu3 %vm38_vm1, %v2260_v58  ;;  %v1760_v6 = vsel %vm348_vm3, %v2260_v58, 0.0 }
0x11f6   :  { %1761 = vadd.xlane.f32.xlu2 %v1760_v6 }
0x11f8   :  { %v2262_v10 = vpop.eup %2261 }
0x11f9   :  { %2145 = vmatmul.msk.f32.vlgmr.msra.gmra.mxu2 %vm38_vm1, %v2262_v10  ;;  %v1757_v50 = vsel %vm348_vm3, %v2262_v10, 0.0 }
0x11fa   :  { %1758 = vadd.xlane.f32.xlu0 %v1757_v50 }
0x1269   :  { %v1762_v51 = vpop.xlane.xlu2 %1761 }
0x126a   :  { %2263 = vrcp.f32 %v1762_v51  ;;  %v1786_v31 = vand.u32 2147483647, %v1762_v51  ;;  %v1788_v14 = vand.u32 2147483648, %v1762_v51  ;;  %vm1782_vm5 = vweird.f32 %v1762_v51 }
0x126c   :  { %vm1787_vm7 = vcmp.eq.f32.partialorder %v1786_v31, 8.507059e+37  ;;  %v1789_v22 = vor.u32 1.1754944e-38, %v1788_v14 }
0x126d   :  { %v1759_v53 = vpop.xlane.xlu0 %1758 }
0x126e   :  { %2265 = vrcp.f32 %v1759_v53  ;;  %v1774_v23 = vand.u32 2147483648, %v1759_v53  ;;  %v1772_v59 = vand.u32 2147483647, %v1759_v53  ;;  %vm1768_vm10 = vweird.f32 %v1759_v53 }
0x1270   :  { %v2264_v54 = vpop.eup %2263  ;;  %v1775_v37 = vor.u32 1.1754944e-38, %v1774_v23  ;;  %vm1773_vm12 = vcmp.eq.f32.partialorder %v1772_v59, 8.507059e+37 }
0x1271   :  { %v1778_v17 = vmul.f32 %v2264_v54, %v1762_v51  ;;  %vm1783_vm4 = vweird.f32 %v2264_v54 }
0x1272   :  { %vm1784_vm6 = vmor %vm1782_vm5, %vm1783_vm4 }
0x1273   :  { %v1779_v9 = vsub.f32 1.0, %v1778_v17 }
0x1274   :  { %v2266_v61 = vpop.eup %2265 }
0x1275   :  { %v1764_v15 = vmul.f32 %v2266_v61, %v1759_v53  ;;  %v1780_v16 = vmul.f32 %v2264_v54, %v1779_v9  ;;  %vm1769_vm8 = vweird.f32 %v2266_v61 }
0x1276   :  { %vm1770_vm11 = vmor %vm1768_vm10, %vm1769_vm8 }
0x1277   :  { %v1765_v19 = vsub.f32 1.0, %v1764_v15  ;;  %v1781_v20 = vadd.f32 %v2264_v54, %v1780_v16 }
0x1278   :  { %v1754_v0 = vpop.f32.mrf.mxu3 }
0x1279   :  { %v1785_v24 = vsel %vm1784_vm6, %v2264_v54, %v1781_v20  ;;  %v1766_v25 = vmul.f32 %v2266_v61, %v1765_v19 }
0x127a   :  { %v1790_v27 = vsel %vm1787_vm7, %v1789_v22, %v1785_v24 }
0x127b   :  { %v1800_v33 = vmul.f32 %v1790_v27, %v1754_v0  ;;  %v1767_v35 = vadd.f32 %v2266_v61, %v1766_v25 }
0x127c   :  { %v1731_v39 = vpop.f32.mrf.mxu2 }
0x127d   :  { %v1771_v38 = vsel %vm1770_vm11, %v2266_v61, %v1767_v35  ;;  %v1803_v41 = vrot.slane %v1800_v33, 7 }
0x127e   :  { %v1776_v57 = vsel %vm1773_vm12, %v1775_v37, %v1771_v38 }
0x127f   :  { %v1799_v42 = vmul.f32 %v1776_v57, %v1731_v39 }
0x1281   :  { %v1804_v8 = vsel %vm387_vm9, %v1803_v41, %v1799_v42 }
0x1282   :  { %v1806_v11 = vadd.f32 %v1804_v8, %v1798_v43 }
0x1284   :  { %2267 = vtanh.f32 %v1806_v11  ;;  %v2147_v52 = vmul.f32 -1.442695, %v1806_v11 }
0x1286   :  { %2269 = vpow2.f32 %v2147_v52 }
0x128a   :  { %v2268_v44 = vpop.eup %2267 }
0x128b   :  { %1829 = vrot.lane.b32.xlu2 %v2268_v44, %s2304_s6 }
0x128c   :  { %v2270_v62 = vpop.eup %2269 }
0x128d   :  { %v1810_v63 = vadd.f32 1.0, %v2270_v62 }
0x128f   :  { %2271 = vrcp.f32 %v1810_v63  ;;  %v1822_v28 = vand.u32 2147483648, %v1810_v63  ;;  %vm1816_vm14 = vweird.f32 %v1810_v63  ;;  %v1820_v5 = vand.u32 2147483647, %v1810_v63 }
0x1291   :  { %v1823_v26 = vor.u32 1.1754944e-38, %v1822_v28  ;;  %vm1821_vm2 = vcmp.eq.f32.partialorder %v1820_v5, 8.507059e+37 }
0x1295   :  { %v2272_v45 = vpop.eup %2271 }
0x1296   :  { %v1812_v46 = vmul.f32 %v2272_v45, %v1810_v63  ;;  %vm1817_vm13 = vweird.f32 %v2272_v45 }
0x1297   :  { %vm1818_vm15 = vmor %vm1816_vm14, %vm1817_vm13 }
0x1298   :  { %v1813_v47 = vsub.f32 1.0, %v1812_v46  ;;  %v2026_v46 = vld [vmem:[#allocation2 + $0xe] sm:$0x3] }
0x129a   :  { %v1814_v48 = vmul.f32 %v2272_v45, %v1813_v47 }
0x129c   :  { %v1815_v55 = vadd.f32 %v2272_v45, %v1814_v48 }
0x129e   :  { %v1819_v7 = vsel %vm1818_vm15, %v2272_v45, %v1815_v55 }
0x129f   :  { %v1824_v1 = vsel %vm1821_vm2, %v1823_v26, %v1819_v7 }
0x12a0   :  { %v1827_v13 = vmul.f32 %v1824_v1, %v2793_v32 }
0x12e5   :  { %v1830_v56 = vpop.permute.xlu2 %1829 }
0x12e6   :  { %v1832_v12 = vmul.f32 %v1830_v56, %v1824_v1 }
0x12e8   :  { %1834 = vrot.lane.b32.xlu1 %v1832_v12, %s2304_s6 }
0x135a   :  { %v1835_v49 = vpop.permute.xlu1 %1834 }
0x135b   :  { %v2828_v58 = vadd.f32 %v1835_v49, %v1827_v13 }
0x135d   :  { %2273 = vtanh.f32 %v2828_v58 }
0x1363   :  { %v2274_v6 = vpop.eup %2273 }
0x1364   :  { %1840 = vrot.lane.b32.xlu1 %v2274_v6, %s2304_s6 }
0x13d6   :  { %v1841_v10 = vpop.permute.xlu1 %1840 }
0x13d7   :  { %v2832_v50 = vmul.f32 %v1841_v10, %v1824_v1 }
0x13d9   :  { %v1851_v51 = vperm.slane %v2832_v50, 0  ;;  %v1850_v53 = vrot.slane %v2832_v50, 1 }
0x13db   :  { %1852 = vrot.lane.b32.xlu1 %v1851_v51, %s2305_s21  ;;  %v1896_v54 = vperm.slane %v1850_v53, 0 }
0x13dd   :  { %1897 = vrot.lane.b32.xlu2 %v1896_v54, %s2305_s21 }
0x1437   :  { %v1898_v32 = vpop.permute.xlu2 %1897 }
0x1438   :  { %2151 = vmatmul.msk.f32.vlgmr.msrb.gmra.mxu2 %vm74_vm0, %v1898_v32  ;;  %2152 = vmatmul.msk.f32.vlgmr.msra.gmra.mxu3 %vm74_vm0, %v1898_v32 }
0x144d   :  { %v1853_v17 = vpop.permute.xlu1 %1852 }
0x144e   :  { %2149 = vmatmul.msk.f32.vlgmr.msrb.gmra.mxu0 %vm74_vm0, %v1853_v17  ;;  %2150 = vmatmul.msk.f32.vlgmr.msrb.gmra.mxu1 %vm74_vm0, %v1853_v17  ;;  %vm444_vm0 = vcmask 254976  }
0x14bb   :  { %v1938_v9 = vpop.f32.mrf.mxu3  ;;  %v1918_v38 = vpop.f32.mrf.mxu2 }
0x14bc   :  { %v1943_v61 = vmul.f32 1.442695, %v1938_v9  ;;  %v2029_v43 = vrot.slane %v1918_v38, 7 }
0x14be   :  { %2275 = vpow2.f32 %v1943_v61 }
0x14c4   :  { %v2276_v31 = vpop.eup %2275 }
0x14c5   :  { %2154 = vmatmul.msk.f32.vlgmr.msra.gmra.mxu1 %vm38_vm1, %v2276_v31  ;;  %v1994_v14 = vsel %vm348_vm3, %v2276_v31, 0.0 }
0x14c6   :  { %1995 = vadd.xlane.f32.xlu2 %v1994_v14 }
0x14cb   :  { %v1893_v15 = vpop.f32.mrf.mxu1  ;;  %v1873_v35 = vpop.f32.mrf.mxu0 }
0x14cc   :  { %v1941_v16 = vmul.f32 1.442695, %v1893_v15  ;;  %v2030_v52 = vsel %vm387_vm9, %v2029_v43, %v1873_v35 }
0x14cd   :  { %v2032_v55 = vadd.f32 %v2030_v52, %v2026_v46 }
0x14ce   :  { %2277 = vpow2.f32 %v1941_v16 }
0x14d4   :  { %v2278_v18 = vpop.eup %2277 }
0x14d5   :  { %2153 = vmatmul.msk.f32.vlgmr.msra.gmra.mxu0 %vm38_vm1, %v2278_v18  ;;  %v1991_v19 = vsel %vm348_vm3, %v2278_v18, 0.0 }
0x14d6   :  { %1992 = vadd.xlane.f32.xlu1 %v1991_v19 }
0x14de   :  { %441 = vrot.lane.b32.xlu2 %v2558_v34, %s2305_s21 }
0x14e6   :  { %1611 = vrot.lane.b32.xlu2 %v2797_v3, %s2305_s21 }
0x14ef   :  { %909 = vrot.lane.b32.xlu1 %v2644_v36, %s2305_s21 }
0x1539   :  { %v1996_v20 = vpop.xlane.xlu2 %1995 }
0x153a   :  { %2279 = vrcp.f32 %v1996_v20  ;;  %v2022_v3 = vand.u32 2147483648, %v1996_v20  ;;  %vm2016_vm3 = vweird.f32 %v1996_v20  ;;  %v2020_v0 = vand.u32 2147483647, %v1996_v20 }
0x153c   :  { %v2023_v37 = vor.u32 1.1754944e-38, %v2022_v3  ;;  %vm2021_vm5 = vcmp.eq.f32.partialorder %v2020_v0, 8.507059e+37 }
0x1540   :  { %v2280_v21 = vpop.eup %2279 }
0x1541   :  { %v2012_v22 = vmul.f32 %v2280_v21, %v1996_v20  ;;  %v442_v23 = vpop.permute.xlu2 %441  ;;  %vm2017_vm1 = vweird.f32 %v2280_v21 }
0x1542   :  { %445 = vst.msk [vmem:[%s2906_s7] sm:$0x3] %vm444_vm0, %v442_v23  ;;  %vm2018_vm4 = vmor %vm2016_vm3, %vm2017_vm1  ;;  %v1988_v42 = vpop.f32.mrf.mxu1 }
0x1543   :  { %v2013_v24 = vsub.f32 1.0, %v2012_v22 }
0x1545   :  { %v2014_v25 = vmul.f32 %v2280_v21, %v2013_v24 }
0x1547   :  { %v2015_v36 = vadd.f32 %v2280_v21, %v2014_v25 }
0x1549   :  { %v1993_v34 = vpop.xlane.xlu1 %1992  ;;  %v1612_v59 = vpop.permute.xlu2 %1611  ;;  %v2019_v29 = vsel %vm2018_vm4, %v2280_v21, %v2015_v36 }
0x154a   :  { %2281 = vrcp.f32 %v1993_v34  ;;  %2140 = vst.msk [vmem:[%s2906_s7 + $0xa] sm:$0x3] %vm444_vm0, %v1612_v59  ;;  %v2024_v39 = vsel %vm2021_vm5, %v2023_v37, %v2019_v29  ;;  %v2008_v57 = vand.u32 2147483648, %v1993_v34  ;;  %v2006_v41 = vand.u32 2147483647, %v1993_v34 }
0x154b   :  { %v2034_v8 = vmul.f32 %v2024_v39, %v1988_v42  ;;  %vm2002_vm7 = vweird.f32 %v1993_v34 }
0x154c   :  { %v2009_v44 = vor.u32 1.1754944e-38, %v2008_v57  ;;  %vm2007_vm10 = vcmp.eq.f32.partialorder %v2006_v41, 8.507059e+37 }
0x154d   :  { %v2037_v47 = vrot.slane %v2034_v8, 7 }
0x1550   :  { %v2282_v27 = vpop.eup %2281 }
0x1551   :  { %v1998_v33 = vmul.f32 %v2282_v27, %v1993_v34  ;;  %vm2003_vm6 = vweird.f32 %v2282_v27 }
0x1552   :  { %vm2004_vm8 = vmor %vm2002_vm7, %vm2003_vm6  ;;  %v1965_v63 = vpop.f32.mrf.mxu0 }
0x1553   :  { %v1999_v60 = vsub.f32 1.0, %v1998_v33 }
0x1555   :  { %v2000_v40 = vmul.f32 %v2282_v27, %v1999_v60 }
0x1557   :  { %v2001_v11 = vadd.f32 %v2282_v27, %v2000_v40 }
0x1559   :  { %v2005_v62 = vsel %vm2004_vm8, %v2282_v27, %v2001_v11 }
0x155a   :  { %v2010_v45 = vsel %vm2007_vm10, %v2009_v44, %v2005_v62 }
0x155b   :  { %v2033_v48 = vmul.f32 %v2010_v45, %v1965_v63 }
0x155d   :  { %v2038_v28 = vsel %vm387_vm9, %v2037_v47, %v2033_v48 }
0x155e   :  { %v2040_v5 = vadd.f32 %v2038_v28, %v2032_v55 }
0x1560   :  { %2283 = vtanh.f32 %v2040_v5  ;;  %v2155_v56 = vmul.f32 -1.442695, %v2040_v5 }
0x1561   :  { %v910_v7 = vpop.permute.xlu1 %909 }
0x1562   :  { %2116 = vst.msk [vmem:[%s2906_s7 + $0x4] sm:$0x3] %vm444_vm0, %v910_v7  ;;  %2285 = vpow2.f32 %v2155_v56 }
0x1566   :  { %v2284_v26 = vpop.eup %2283 }
0x1567   :  { %2063 = vrot.lane.b32.xlu0 %v2284_v26, %s2304_s6 }
0x1568   :  { %v2286_v1 = vpop.eup %2285 }
0x1569   :  { %v2044_v12 = vadd.f32 1.0, %v2286_v1 }
0x156b   :  { %2287 = vrcp.f32 %v2044_v12  ;;  %v2056_v53 = vand.u32 2147483648, %v2044_v12  ;;  %vm2050_vm11 = vweird.f32 %v2044_v12  ;;  %v2054_v54 = vand.u32 2147483647, %v2044_v12 }
0x156d   :  { %v2057_v17 = vor.u32 1.1754944e-38, %v2056_v53  ;;  %vm2055_vm13 = vcmp.eq.f32.partialorder %v2054_v54, 8.507059e+37 }
0x1571   :  { %v2288_v13 = vpop.eup %2287 }
0x1572   :  { %v2046_v49 = vmul.f32 %v2288_v13, %v2044_v12  ;;  %vm2051_vm9 = vweird.f32 %v2288_v13 }
0x1573   :  { %vm2052_vm12 = vmor %vm2050_vm11, %vm2051_vm9 }
0x1574   :  { %v2047_v6 = vsub.f32 1.0, %v2046_v49 }
0x1576   :  { %v2048_v10 = vmul.f32 %v2288_v13, %v2047_v6 }
0x1578   :  { %v2049_v51 = vadd.f32 %v2288_v13, %v2048_v10 }
0x157a   :  { %v2053_v32 = vsel %vm2052_vm12, %v2288_v13, %v2049_v51 }
0x157b   :  { %v2058_v61 = vsel %vm2055_vm13, %v2057_v17, %v2053_v32 }
0x157c   :  { %v2061_v14 = vmul.f32 %v2058_v61, %v2828_v58 }
0x15d9   :  { %v2064_v9 = vpop.permute.xlu0 %2063 }
0x15da   :  { %v2066_v31 = vmul.f32 %v2064_v9, %v2058_v61 }
0x15dc   :  { %2068 = vrot.lane.b32.xlu0 %v2066_v31, %s2304_s6 }
0x164e   :  { %v2069_v15 = vpop.permute.xlu0 %2068 }
0x164f   :  { %v2071_v16 = vadd.f32 %v2069_v15, %v2061_v14 }
0x1651   :  { %2289 = vtanh.f32 %v2071_v16 }
0x1657   :  { %v2290_v18 = vpop.eup %2289 }
0x1658   :  { %2074 = vrot.lane.b32.xlu0 %v2290_v18, %s2304_s6 }
0x1660   :  { %675 = vrot.lane.b32.xlu0 %v2601_v4, %s2305_s21 }
0x1668   :  { %1143 = vrot.lane.b32.xlu0 %v2691_v2, %s2305_s21 }
0x1670   :  { %1377 = vrot.lane.b32.xlu0 %v2754_v30, %s2305_s21 }
0x1678   :  { %1845 = vrot.lane.b32.xlu0 %v2832_v50, %s2305_s21 }
0x16ca   :  { %v2075_v19 = vpop.permute.xlu0 %2074 }
0x16cb   :  { %v2077_v58 = vmul.f32 %v2075_v19, %v2058_v61 }
0x16cd   :  { %2079 = vrot.lane.b32.xlu1 %v2077_v58, %s2305_s21 }
0x16d2   :  { %v676_v20 = vpop.permute.xlu0 %675 }
0x16d3   :  { %2108 = vst.msk [vmem:[%s2906_s7 + $0x2] sm:$0x3] %vm444_vm0, %v676_v20 }
0x16da   :  { %v1144_v4 = vpop.permute.xlu0 %1143 }
0x16db   :  { %2124 = vst.msk [vmem:[%s2906_s7 + $0x6] sm:$0x3] %vm444_vm0, %v1144_v4 }
0x16e2   :  { %v1378_v2 = vpop.permute.xlu0 %1377 }
0x16e3   :  { %2132 = vst.msk [vmem:[%s2906_s7 + $0x8] sm:$0x3] %vm444_vm0, %v1378_v2 }
0x16ea   :  { %v1846_v30 = vpop.permute.xlu0 %1845 }
0x16eb   :  { %2148 = vst.msk [vmem:[%s2906_s7 + $0xc] sm:$0x3] %vm444_vm0, %v1846_v30 }
0x173f   :  { %v2080_v50 = vpop.permute.xlu1 %2079 }
0x1740   :  { %2156 = vst.msk [vmem:[%s2906_s7 + $0xe] sm:$0x3] %vm444_vm0, %v2080_v50 }

</bundles_post_ra>
